<compile_context>
chip_gen: v6e
topology: v6e:2x2x1
jax: 0.10.0
libtpu: 0.0.40
codegen_flags: <defaults>
</compile_context>

<pallas_src>
import math
from functools import partial

import jax
import jax.numpy as jnp
from jax import lax
from jax.experimental import pallas as pl
from jax.experimental.pallas import tpu as pltpu


def _mha_kernel(x_ref, wq_ref, wk_ref, wv_ref, bq_ref, bk_ref, bv_ref,
                mask_ref, *out_refs, num_heads, head_size, write_probs,
                approx_recip):
    # x_ref:    (1, S, H)   — one batch element, compute dtype (f32 or bf16)
    # w*_ref:   (H, H)      — transposed linear weights (in, out), compute dtype
    # b*_ref:   (1, H)      — f32 biases
    # mask_ref: (1, 1, S)   — f32 additive attention mask for this batch
    # out_refs: out_ref (1, S, H) [, probs_ref (1, nh, S, S)]
    if write_probs:
        out_ref, probs_ref = out_refs
    else:
        (out_ref,) = out_refs
        probs_ref = None

    x = x_ref[0]                      # (S, H)
    mask = mask_ref[0]                # (1, S) -> broadcasts over query rows
    mm_dtype = x.dtype                # MXU operand dtype (f32 or bf16)
    scale = 1.0 / math.sqrt(head_size)

    # Full-width QKV projections: one (S,H)x(H,H) MXU matmul each,
    # f32 accumulation, bias add in f32.
    q = jnp.dot(x, wq_ref[...], preferred_element_type=jnp.float32) + bq_ref[...]
    k = jnp.dot(x, wk_ref[...], preferred_element_type=jnp.float32) + bk_ref[...]
    v = jnp.dot(x, wv_ref[...], preferred_element_type=jnp.float32) + bv_ref[...]

    # Fold the attention scale into Q (S*H multiplies instead of S*S per head).
    q = (q * scale).astype(mm_dtype)
    k = k.astype(mm_dtype)
    v = v.astype(mm_dtype)

    ctx_parts = []
    for h in range(num_heads):        # static loop (num_heads is small: 8)
        sl = slice(h * head_size, (h + 1) * head_size)
        q_h = q[:, sl]                # (S, d)
        k_h = k[:, sl]                # (S, d)
        v_h = v[:, sl]                # (S, d)

        # scores = q_h @ k_h^T without materializing a transpose.
        scores = lax.dot_general(
            q_h, k_h, (((1,), (1,)), ((), ())),
            preferred_element_type=jnp.float32)      # (S, S) f32
        scores = scores + mask                       # additive mask

        # Numerically-stable softmax; divide goes through the EUP reciprocal.
        m = jnp.max(scores, axis=-1, keepdims=True)
        e = jnp.exp(scores - m)
        denom = jnp.sum(e, axis=-1, keepdims=True)
        probs = e * pl.reciprocal(denom, approx=approx_recip)

        if probs_ref is not None:
            probs_ref[0, h] = probs.astype(probs_ref.dtype)

        # Dropout on probs: identity in eval mode.
        ctx_parts.append(
            jnp.dot(probs.astype(mm_dtype), v_h,
                    preferred_element_type=jnp.float32))  # (S, d) f32

    # Single lane-dense (S, H) store instead of per-head column strips.
    out_ref[0] = jnp.concatenate(ctx_parts, axis=-1).astype(out_ref.dtype)


def _pick_vmem_limit_bytes():
    """Explicit scoped-VMEM budget with headroom; works across v5e/v6e/v7x."""
    try:
        cap = int(pltpu.get_tpu_info().vmem_capacity_bytes)
        return min(64 * 1024 * 1024, (cap * 3) // 4)
    except Exception:
        return 32 * 1024 * 1024


def multi_head_attention(hidden_states, params, attention_mask=None, *,
                         num_heads, output_attentions=False,
                         compute_dtype=None):
    """hidden_states: (B, S, H). Returns (context, attention_probs_or_None)."""
    B, S, H = hidden_states.shape
    head_size = H // num_heads
    in_dtype = hidden_states.dtype

    if compute_dtype is None:
        compute_dtype = in_dtype
    use_bf16 = jnp.dtype(compute_dtype) == jnp.dtype(jnp.bfloat16)
    approx_recip = bool(use_bf16)     # exact reciprocal on the f32 path

    x = hidden_states.astype(compute_dtype)
    wq_t = params["wq"].T.astype(compute_dtype)   # (H, H): (in, out)
    wk_t = params["wk"].T.astype(compute_dtype)
    wv_t = params["wv"].T.astype(compute_dtype)
    bq = params["bq"].reshape(1, H).astype(jnp.float32)
    bk = params["bk"].reshape(1, H).astype(jnp.float32)
    bv = params["bv"].reshape(1, H).astype(jnp.float32)

    if attention_mask is None:
        mask = jnp.zeros((B, 1, S), dtype=jnp.float32)
    else:
        # Accept (B,S), (B,1,S) or (B,1,1,S) -> (B,1,S) additive mask.
        mask = attention_mask.astype(jnp.float32).reshape(B, 1, S)

    kernel = partial(_mha_kernel, num_heads=num_heads, head_size=head_size,
                     write_probs=output_attentions, approx_recip=approx_recip)

    ctx_shape = jax.ShapeDtypeStruct((B, S, H), in_dtype)
    ctx_spec = pl.BlockSpec((1, S, H), lambda b: (b, 0, 0))
    if output_attentions:
        out_shape = (ctx_shape,
                     jax.ShapeDtypeStruct((B, num_heads, S, S), jnp.float32))
        out_specs = [ctx_spec,
                     pl.BlockSpec((1, num_heads, S, S), lambda b: (b, 0, 0, 0))]
    else:
        out_shape = ctx_shape
        out_specs = ctx_spec

    grid_spec = pltpu.PrefetchScalarGridSpec(
        num_scalar_prefetch=0,
        grid=(B,),
        in_specs=[
            pl.BlockSpec((1, S, H), lambda b: (b, 0, 0)),   # hidden_states
            pl.BlockSpec((H, H), lambda b: (0, 0)),         # Wq^T
            pl.BlockSpec((H, H), lambda b: (0, 0)),         # Wk^T
            pl.BlockSpec((H, H), lambda b: (0, 0)),         # Wv^T
            pl.BlockSpec((1, H), lambda b: (0, 0)),         # bq
            pl.BlockSpec((1, H), lambda b: (0, 0)),         # bk
            pl.BlockSpec((1, H), lambda b: (0, 0)),         # bv
            pl.BlockSpec((1, 1, S), lambda b: (b, 0, 0)),   # additive mask
        ],
        out_specs=out_specs,
    )

    result = pl.pallas_call(
        kernel,
        out_shape=out_shape,
        grid_spec=grid_spec,
        compiler_params=pltpu.CompilerParams(
            dimension_semantics=("parallel",),
            vmem_limit_bytes=_pick_vmem_limit_bytes()),
    )(x, wq_t, wk_t, wv_t, bq, bk, bv, mask)

    if output_attentions:
        context, probs = result
        return context, probs
    return result, None


def _reference(hidden_states, params, attention_mask, num_heads):
    """Pure-JAX reference mirroring the PyTorch forward (eval mode)."""
    B, S, H = hidden_states.shape
    d = H // num_heads
    hp = lax.Precision.HIGHEST
    q = jnp.dot(hidden_states, params["wq"].T, precision=hp) + params["bq"]
    k = jnp.dot(hidden_states, params["wk"].T, precision=hp) + params["bk"]
    v = jnp.dot(hidden_states, params["wv"].T, precision=hp) + params["bv"]

    def split(t):  # (B,S,H) -> (B,nh,S,d)
        return t.reshape(B, S, num_heads, d).transpose(0, 2, 1, 3)

    q, k, v = split(q), split(k), split(v)
    scores = jnp.einsum("bhqd,bhkd->bhqk", q, k, precision=hp) / math.sqrt(d)
    if attention_mask is not None:
        scores = scores + attention_mask.reshape(B, 1, 1, S)
    probs = jax.nn.softmax(scores, axis=-1)
    ctx = jnp.einsum("bhqk,bhkd->bhqd", probs, v, precision=hp)
    ctx = ctx.transpose(0, 2, 1, 3).reshape(B, S, H)
    return ctx, probs


if __name__ == "__main__":
    # Config-consistent small shapes: hidden=256, heads=8 (head_size=32).
    B, S, H = 2, 16, 256
    NUM_HEADS = 8

    key = jax.random.PRNGKey(0)
    kx, kq, kk, kv, kbq, kbk, kbv = jax.random.split(key, 7)

    hidden_states = jax.random.normal(kx, (B, S, H), dtype=jnp.float32)

    # Deterministic parameter init (torch.nn.Linear-like uniform bounds).
    bound = 1.0 / math.sqrt(H)
    params = {
        "wq": jax.random.uniform(kq, (H, H), jnp.float32, -bound, bound),
        "wk": jax.random.uniform(kk, (H, H), jnp.float32, -bound, bound),
        "wv": jax.random.uniform(kv, (H, H), jnp.float32, -bound, bound),
        "bq": jax.random.uniform(kbq, (H,), jnp.float32, -bound, bound),
        "bk": jax.random.uniform(kbk, (H,), jnp.float32, -bound, bound),
        "bv": jax.random.uniform(kbv, (H,), jnp.float32, -bound, bound),
    }

    # Additive attention mask: mask out the last 4 keys of batch element 1.
    attention_mask = jnp.zeros((B, S), dtype=jnp.float32)
    attention_mask = attention_mask.at[1, -4:].set(-10000.0)

    ref_ctx, ref_probs = _reference(hidden_states, params, attention_mask,
                                    NUM_HEADS)

    # 1) Full-precision path with attention probabilities (tight check).
    context, probs = multi_head_attention(
        hidden_states, params, attention_mask,
        num_heads=NUM_HEADS, output_attentions=True)
    context = jax.block_until_ready(context)
    probs = jax.block_until_ready(probs)

    assert context.shape == (B, S, H)
    assert probs.shape == (B, NUM_HEADS, S, S)
    assert jnp.allclose(context, ref_ctx, atol=1e-3, rtol=1e-3)
    assert jnp.allclose(probs, ref_probs, atol=1e-4, rtol=1e-3)

    # 2) bf16 MXU fast path, no probs writeback (loose check: reduced precision).
    ctx_bf16, none_probs = multi_head_attention(
        hidden_states, params, attention_mask,
        num_heads=NUM_HEADS, output_attentions=False,
        compute_dtype=jnp.bfloat16)
    ctx_bf16 = jax.block_until_ready(ctx_bf16)

    assert none_probs is None
    assert ctx_bf16.shape == (B, S, H)
    assert jnp.allclose(ctx_bf16.astype(jnp.float32), ref_ctx,
                        atol=5e-2, rtol=5e-2)

    print("KERNEL_OK")
</pallas_src>

<mosaic_0001>
module attributes {stable_mosaic.version = 11 : i64} {
  func.func @_mha_kernel(%arg0: i32, %arg1: memref<1x16x256xf32, #tpu.memory_space<vmem>>, %arg2: memref<256x256xf32, #tpu.memory_space<vmem>>, %arg3: memref<256x256xf32, #tpu.memory_space<vmem>>, %arg4: memref<256x256xf32, #tpu.memory_space<vmem>>, %arg5: memref<1x256xf32, #tpu.memory_space<vmem>>, %arg6: memref<1x256xf32, #tpu.memory_space<vmem>>, %arg7: memref<1x256xf32, #tpu.memory_space<vmem>>, %arg8: memref<1x1x16xf32, #tpu.memory_space<vmem>>, %arg9: memref<1x16x256xf32, #tpu.memory_space<vmem>>, %arg10: memref<1x8x16x16xf32, #tpu.memory_space<vmem>>) attributes {dimension_semantics = [#tpu.dimension_semantics<parallel>], iteration_bounds = array<i64: 2>, scalar_prefetch = 0 : i64, scratch_operands = 0 : i64, tpu.core_type = #tpu.core_type<tc>, window_params = [{transform_indices = @transform_0, window_bounds = array<i64: 1, 16, 256>}, {pipeline_mode = #tpu.pipeline_mode<synchronous>, transform_indices = @transform_1, window_bounds = array<i64: 256, 256>}, {pipeline_mode = #tpu.pipeline_mode<synchronous>, transform_indices = @transform_2, window_bounds = array<i64: 256, 256>}, {pipeline_mode = #tpu.pipeline_mode<synchronous>, transform_indices = @transform_3, window_bounds = array<i64: 256, 256>}, {pipeline_mode = #tpu.pipeline_mode<synchronous>, transform_indices = @transform_4, window_bounds = array<i64: 1, 256>}, {pipeline_mode = #tpu.pipeline_mode<synchronous>, transform_indices = @transform_5, window_bounds = array<i64: 1, 256>}, {pipeline_mode = #tpu.pipeline_mode<synchronous>, transform_indices = @transform_6, window_bounds = array<i64: 1, 256>}, {transform_indices = @transform_7, window_bounds = array<i64: 1, 1, 16>}, {transform_indices = @transform_8, window_bounds = array<i64: 1, 16, 256>}, {transform_indices = @transform_9, window_bounds = array<i64: 1, 8, 16, 16>}]} {
    %c0 = arith.constant 0 : index
    %c0_0 = arith.constant 0 : index
    %c0_1 = arith.constant 0 : index
    %0 = vector.load %arg1[%c0, %c0_0, %c0_1] : memref<1x16x256xf32, #tpu.memory_space<vmem>>, vector<1x16x256xf32>
    %1 = vector.shape_cast %0 : vector<1x16x256xf32> to vector<16x256xf32>
    %c0_2 = arith.constant 0 : index
    %c0_3 = arith.constant 0 : index
    %c0_4 = arith.constant 0 : index
    %2 = vector.load %arg8[%c0_2, %c0_3, %c0_4] : memref<1x1x16xf32, #tpu.memory_space<vmem>>, vector<1x1x16xf32>
    %3 = vector.shape_cast %2 : vector<1x1x16xf32> to vector<1x16xf32>
    %c0_5 = arith.constant 0 : index
    %c0_6 = arith.constant 0 : index
    %4 = vector.load %arg2[%c0_5, %c0_6] : memref<256x256xf32, #tpu.memory_space<vmem>>, vector<256x256xf32>
    %cst = arith.constant dense<0.000000e+00> : vector<16x256xf32>
    %5 = tpu.matmul %1, %4, %cst {dimension_numbers = #tpu.dot_dimension_numbers<[1], [0], [0], [1], [0, 0, 1, 1], [], []>} : vector<16x256xf32>, vector<256x256xf32>, vector<16x256xf32> -> vector<16x256xf32>
    %c0_7 = arith.constant 0 : index
    %c0_8 = arith.constant 0 : index
    %6 = vector.load %arg5[%c0_7, %c0_8] : memref<1x256xf32, #tpu.memory_space<vmem>>, vector<1x256xf32>
    %7 = vector.broadcast %6 : vector<1x256xf32> to vector<16x256xf32>
    %8 = arith.addf %5, %7 : vector<16x256xf32>
    %c0_9 = arith.constant 0 : index
    %c0_10 = arith.constant 0 : index
    %9 = vector.load %arg3[%c0_9, %c0_10] : memref<256x256xf32, #tpu.memory_space<vmem>>, vector<256x256xf32>
    %cst_11 = arith.constant dense<0.000000e+00> : vector<16x256xf32>
    %10 = tpu.matmul %1, %9, %cst_11 {dimension_numbers = #tpu.dot_dimension_numbers<[1], [0], [0], [1], [0, 0, 1, 1], [], []>} : vector<16x256xf32>, vector<256x256xf32>, vector<16x256xf32> -> vector<16x256xf32>
    %c0_12 = arith.constant 0 : index
    %c0_13 = arith.constant 0 : index
    %11 = vector.load %arg6[%c0_12, %c0_13] : memref<1x256xf32, #tpu.memory_space<vmem>>, vector<1x256xf32>
    %12 = vector.broadcast %11 : vector<1x256xf32> to vector<16x256xf32>
    %13 = arith.addf %10, %12 : vector<16x256xf32>
    %c0_14 = arith.constant 0 : index
    %c0_15 = arith.constant 0 : index
    %14 = vector.load %arg4[%c0_14, %c0_15] : memref<256x256xf32, #tpu.memory_space<vmem>>, vector<256x256xf32>
    %cst_16 = arith.constant dense<0.000000e+00> : vector<16x256xf32>
    %15 = tpu.matmul %1, %14, %cst_16 {dimension_numbers = #tpu.dot_dimension_numbers<[1], [0], [0], [1], [0, 0, 1, 1], [], []>} : vector<16x256xf32>, vector<256x256xf32>, vector<16x256xf32> -> vector<16x256xf32>
    %c0_17 = arith.constant 0 : index
    %c0_18 = arith.constant 0 : index
    %16 = vector.load %arg7[%c0_17, %c0_18] : memref<1x256xf32, #tpu.memory_space<vmem>>, vector<1x256xf32>
    %17 = vector.broadcast %16 : vector<1x256xf32> to vector<16x256xf32>
    %18 = arith.addf %15, %17 : vector<16x256xf32>
    %cst_19 = arith.constant 0.176776692 : f32
    %19 = vector.broadcast %cst_19 : f32 to vector<16x256xf32>
    %20 = arith.mulf %8, %19 : vector<16x256xf32>
    %21 = vector.extract_strided_slice %20 {offsets = [0, 0], sizes = [16, 32], strides = [1, 1]} : vector<16x256xf32> to vector<16x32xf32>
    %22 = vector.extract_strided_slice %13 {offsets = [0, 0], sizes = [16, 32], strides = [1, 1]} : vector<16x256xf32> to vector<16x32xf32>
    %23 = vector.extract_strided_slice %18 {offsets = [0, 0], sizes = [16, 32], strides = [1, 1]} : vector<16x256xf32> to vector<16x32xf32>
    %cst_20 = arith.constant dense<0.000000e+00> : vector<16x16xf32>
    %24 = tpu.matmul %21, %22, %cst_20 {dimension_numbers = #tpu.dot_dimension_numbers<[1], [1], [0], [0], [0, 0, 1, 0], [], []>} : vector<16x32xf32>, vector<16x32xf32>, vector<16x16xf32> -> vector<16x16xf32>
    %25 = vector.broadcast %3 : vector<1x16xf32> to vector<16x16xf32>
    %26 = arith.addf %24, %25 : vector<16x16xf32>
    %cst_21 = arith.constant dense<0xFF800000> : vector<16xf32>
    %27 = vector.multi_reduction <maximumf>, %26, %cst_21 [1] : vector<16x16xf32> to vector<16xf32>
    %28 = vector.shape_cast %27 : vector<16xf32> to vector<16x1xf32>
    %29 = vector.broadcast %28 : vector<16x1xf32> to vector<16x16xf32>
    %30 = arith.subf %26, %29 : vector<16x16xf32>
    %31 = math.exp %30 : vector<16x16xf32>
    %cst_22 = arith.constant dense<0.000000e+00> : vector<16xf32>
    %32 = vector.multi_reduction <add>, %31, %cst_22 [1] : vector<16x16xf32> to vector<16xf32>
    %33 = vector.shape_cast %32 : vector<16xf32> to vector<16x1xf32>
    %34 = tpu.reciprocal %33 : vector<16x1xf32> -> vector<16x1xf32>
    %35 = vector.broadcast %34 : vector<16x1xf32> to vector<16x16xf32>
    %36 = arith.mulf %31, %35 : vector<16x16xf32>
    %c0_23 = arith.constant 0 : index
    %c0_24 = arith.constant 0 : index
    %c0_25 = arith.constant 0 : index
    %c0_26 = arith.constant 0 : index
    %37 = vector.load %arg10[%c0_23, %c0_24, %c0_25, %c0_26] : memref<1x8x16x16xf32, #tpu.memory_space<vmem>>, vector<1x1x16x16xf32>
    %38 = vector.shape_cast %37 : vector<1x1x16x16xf32> to vector<16x16xf32>
    %39 = vector.shape_cast %36 : vector<16x16xf32> to vector<1x1x16x16xf32>
    tpu.vector_store %arg10[%c0_23, %c0_24, %c0_25, %c0_26], %39 {strides = array<i32>} : memref<1x8x16x16xf32, #tpu.memory_space<vmem>>, vector<1x1x16x16xf32>,
    %cst_27 = arith.constant dense<0.000000e+00> : vector<16x32xf32>
    %40 = tpu.matmul %36, %23, %cst_27 {dimension_numbers = #tpu.dot_dimension_numbers<[1], [0], [0], [1], [0, 0, 1, 1], [], []>} : vector<16x16xf32>, vector<16x32xf32>, vector<16x32xf32> -> vector<16x32xf32>
    %41 = vector.extract_strided_slice %20 {offsets = [0, 32], sizes = [16, 32], strides = [1, 1]} : vector<16x256xf32> to vector<16x32xf32>
    %42 = vector.extract_strided_slice %13 {offsets = [0, 32], sizes = [16, 32], strides = [1, 1]} : vector<16x256xf32> to vector<16x32xf32>
    %43 = vector.extract_strided_slice %18 {offsets = [0, 32], sizes = [16, 32], strides = [1, 1]} : vector<16x256xf32> to vector<16x32xf32>
    %cst_28 = arith.constant dense<0.000000e+00> : vector<16x16xf32>
    %44 = tpu.matmul %41, %42, %cst_28 {dimension_numbers = #tpu.dot_dimension_numbers<[1], [1], [0], [0], [0, 0, 1, 0], [], []>} : vector<16x32xf32>, vector<16x32xf32>, vector<16x16xf32> -> vector<16x16xf32>
    %45 = vector.broadcast %3 : vector<1x16xf32> to vector<16x16xf32>
    %46 = arith.addf %44, %45 : vector<16x16xf32>
    %cst_29 = arith.constant dense<0xFF800000> : vector<16xf32>
    %47 = vector.multi_reduction <maximumf>, %46, %cst_29 [1] : vector<16x16xf32> to vector<16xf32>
    %48 = vector.shape_cast %47 : vector<16xf32> to vector<16x1xf32>
    %49 = vector.broadcast %48 : vector<16x1xf32> to vector<16x16xf32>
    %50 = arith.subf %46, %49 : vector<16x16xf32>
    %51 = math.exp %50 : vector<16x16xf32>
    %cst_30 = arith.constant dense<0.000000e+00> : vector<16xf32>
    %52 = vector.multi_reduction <add>, %51, %cst_30 [1] : vector<16x16xf32> to vector<16xf32>
    %53 = vector.shape_cast %52 : vector<16xf32> to vector<16x1xf32>
    %54 = tpu.reciprocal %53 : vector<16x1xf32> -> vector<16x1xf32>
    %55 = vector.broadcast %54 : vector<16x1xf32> to vector<16x16xf32>
    %56 = arith.mulf %51, %55 : vector<16x16xf32>
    %c0_31 = arith.constant 0 : index
    %c1 = arith.constant 1 : index
    %c0_32 = arith.constant 0 : index
    %c0_33 = arith.constant 0 : index
    %57 = vector.load %arg10[%c0_31, %c1, %c0_32, %c0_33] : memref<1x8x16x16xf32, #tpu.memory_space<vmem>>, vector<1x1x16x16xf32>
    %58 = vector.shape_cast %57 : vector<1x1x16x16xf32> to vector<16x16xf32>
    %59 = vector.shape_cast %56 : vector<16x16xf32> to vector<1x1x16x16xf32>
    tpu.vector_store %arg10[%c0_31, %c1, %c0_32, %c0_33], %59 {strides = array<i32>} : memref<1x8x16x16xf32, #tpu.memory_space<vmem>>, vector<1x1x16x16xf32>,
    %cst_34 = arith.constant dense<0.000000e+00> : vector<16x32xf32>
    %60 = tpu.matmul %56, %43, %cst_34 {dimension_numbers = #tpu.dot_dimension_numbers<[1], [0], [0], [1], [0, 0, 1, 1], [], []>} : vector<16x16xf32>, vector<16x32xf32>, vector<16x32xf32> -> vector<16x32xf32>
    %61 = vector.extract_strided_slice %20 {offsets = [0, 64], sizes = [16, 32], strides = [1, 1]} : vector<16x256xf32> to vector<16x32xf32>
    %62 = vector.extract_strided_slice %13 {offsets = [0, 64], sizes = [16, 32], strides = [1, 1]} : vector<16x256xf32> to vector<16x32xf32>
    %63 = vector.extract_strided_slice %18 {offsets = [0, 64], sizes = [16, 32], strides = [1, 1]} : vector<16x256xf32> to vector<16x32xf32>
    %cst_35 = arith.constant dense<0.000000e+00> : vector<16x16xf32>
    %64 = tpu.matmul %61, %62, %cst_35 {dimension_numbers = #tpu.dot_dimension_numbers<[1], [1], [0], [0], [0, 0, 1, 0], [], []>} : vector<16x32xf32>, vector<16x32xf32>, vector<16x16xf32> -> vector<16x16xf32>
    %65 = vector.broadcast %3 : vector<1x16xf32> to vector<16x16xf32>
    %66 = arith.addf %64, %65 : vector<16x16xf32>
    %cst_36 = arith.constant dense<0xFF800000> : vector<16xf32>
    %67 = vector.multi_reduction <maximumf>, %66, %cst_36 [1] : vector<16x16xf32> to vector<16xf32>
    %68 = vector.shape_cast %67 : vector<16xf32> to vector<16x1xf32>
    %69 = vector.broadcast %68 : vector<16x1xf32> to vector<16x16xf32>
    %70 = arith.subf %66, %69 : vector<16x16xf32>
    %71 = math.exp %70 : vector<16x16xf32>
    %cst_37 = arith.constant dense<0.000000e+00> : vector<16xf32>
    %72 = vector.multi_reduction <add>, %71, %cst_37 [1] : vector<16x16xf32> to vector<16xf32>
    %73 = vector.shape_cast %72 : vector<16xf32> to vector<16x1xf32>
    %74 = tpu.reciprocal %73 : vector<16x1xf32> -> vector<16x1xf32>
    %75 = vector.broadcast %74 : vector<16x1xf32> to vector<16x16xf32>
    %76 = arith.mulf %71, %75 : vector<16x16xf32>
    %c0_38 = arith.constant 0 : index
    %c2 = arith.constant 2 : index
    %c0_39 = arith.constant 0 : index
    %c0_40 = arith.constant 0 : index
    %77 = vector.load %arg10[%c0_38, %c2, %c0_39, %c0_40] : memref<1x8x16x16xf32, #tpu.memory_space<vmem>>, vector<1x1x16x16xf32>
    %78 = vector.shape_cast %77 : vector<1x1x16x16xf32> to vector<16x16xf32>
    %79 = vector.shape_cast %76 : vector<16x16xf32> to vector<1x1x16x16xf32>
    tpu.vector_store %arg10[%c0_38, %c2, %c0_39, %c0_40], %79 {strides = array<i32>} : memref<1x8x16x16xf32, #tpu.memory_space<vmem>>, vector<1x1x16x16xf32>,
    %cst_41 = arith.constant dense<0.000000e+00> : vector<16x32xf32>
    %80 = tpu.matmul %76, %63, %cst_41 {dimension_numbers = #tpu.dot_dimension_numbers<[1], [0], [0], [1], [0, 0, 1, 1], [], []>} : vector<16x16xf32>, vector<16x32xf32>, vector<16x32xf32> -> vector<16x32xf32>
    %81 = vector.extract_strided_slice %20 {offsets = [0, 96], sizes = [16, 32], strides = [1, 1]} : vector<16x256xf32> to vector<16x32xf32>
    %82 = vector.extract_strided_slice %13 {offsets = [0, 96], sizes = [16, 32], strides = [1, 1]} : vector<16x256xf32> to vector<16x32xf32>
    %83 = vector.extract_strided_slice %18 {offsets = [0, 96], sizes = [16, 32], strides = [1, 1]} : vector<16x256xf32> to vector<16x32xf32>
    %cst_42 = arith.constant dense<0.000000e+00> : vector<16x16xf32>
    %84 = tpu.matmul %81, %82, %cst_42 {dimension_numbers = #tpu.dot_dimension_numbers<[1], [1], [0], [0], [0, 0, 1, 0], [], []>} : vector<16x32xf32>, vector<16x32xf32>, vector<16x16xf32> -> vector<16x16xf32>
    %85 = vector.broadcast %3 : vector<1x16xf32> to vector<16x16xf32>
    %86 = arith.addf %84, %85 : vector<16x16xf32>
    %cst_43 = arith.constant dense<0xFF800000> : vector<16xf32>
    %87 = vector.multi_reduction <maximumf>, %86, %cst_43 [1] : vector<16x16xf32> to vector<16xf32>
    %88 = vector.shape_cast %87 : vector<16xf32> to vector<16x1xf32>
    %89 = vector.broadcast %88 : vector<16x1xf32> to vector<16x16xf32>
    %90 = arith.subf %86, %89 : vector<16x16xf32>
    %91 = math.exp %90 : vector<16x16xf32>
    %cst_44 = arith.constant dense<0.000000e+00> : vector<16xf32>
    %92 = vector.multi_reduction <add>, %91, %cst_44 [1] : vector<16x16xf32> to vector<16xf32>
    %93 = vector.shape_cast %92 : vector<16xf32> to vector<16x1xf32>
    %94 = tpu.reciprocal %93 : vector<16x1xf32> -> vector<16x1xf32>
    %95 = vector.broadcast %94 : vector<16x1xf32> to vector<16x16xf32>
    %96 = arith.mulf %91, %95 : vector<16x16xf32>
    %c0_45 = arith.constant 0 : index
    %c3 = arith.constant 3 : index
    %c0_46 = arith.constant 0 : index
    %c0_47 = arith.constant 0 : index
    %97 = vector.load %arg10[%c0_45, %c3, %c0_46, %c0_47] : memref<1x8x16x16xf32, #tpu.memory_space<vmem>>, vector<1x1x16x16xf32>
    %98 = vector.shape_cast %97 : vector<1x1x16x16xf32> to vector<16x16xf32>
    %99 = vector.shape_cast %96 : vector<16x16xf32> to vector<1x1x16x16xf32>
    tpu.vector_store %arg10[%c0_45, %c3, %c0_46, %c0_47], %99 {strides = array<i32>} : memref<1x8x16x16xf32, #tpu.memory_space<vmem>>, vector<1x1x16x16xf32>,
    %cst_48 = arith.constant dense<0.000000e+00> : vector<16x32xf32>
    %100 = tpu.matmul %96, %83, %cst_48 {dimension_numbers = #tpu.dot_dimension_numbers<[1], [0], [0], [1], [0, 0, 1, 1], [], []>} : vector<16x16xf32>, vector<16x32xf32>, vector<16x32xf32> -> vector<16x32xf32>
    %101 = vector.extract_strided_slice %20 {offsets = [0, 128], sizes = [16, 32], strides = [1, 1]} : vector<16x256xf32> to vector<16x32xf32>
    %102 = vector.extract_strided_slice %13 {offsets = [0, 128], sizes = [16, 32], strides = [1, 1]} : vector<16x256xf32> to vector<16x32xf32>
    %103 = vector.extract_strided_slice %18 {offsets = [0, 128], sizes = [16, 32], strides = [1, 1]} : vector<16x256xf32> to vector<16x32xf32>
    %cst_49 = arith.constant dense<0.000000e+00> : vector<16x16xf32>
    %104 = tpu.matmul %101, %102, %cst_49 {dimension_numbers = #tpu.dot_dimension_numbers<[1], [1], [0], [0], [0, 0, 1, 0], [], []>} : vector<16x32xf32>, vector<16x32xf32>, vector<16x16xf32> -> vector<16x16xf32>
    %105 = vector.broadcast %3 : vector<1x16xf32> to vector<16x16xf32>
    %106 = arith.addf %104, %105 : vector<16x16xf32>
    %cst_50 = arith.constant dense<0xFF800000> : vector<16xf32>
    %107 = vector.multi_reduction <maximumf>, %106, %cst_50 [1] : vector<16x16xf32> to vector<16xf32>
    %108 = vector.shape_cast %107 : vector<16xf32> to vector<16x1xf32>
    %109 = vector.broadcast %108 : vector<16x1xf32> to vector<16x16xf32>
    %110 = arith.subf %106, %109 : vector<16x16xf32>
    %111 = math.exp %110 : vector<16x16xf32>
    %cst_51 = arith.constant dense<0.000000e+00> : vector<16xf32>
    %112 = vector.multi_reduction <add>, %111, %cst_51 [1] : vector<16x16xf32> to vector<16xf32>
    %113 = vector.shape_cast %112 : vector<16xf32> to vector<16x1xf32>
    %114 = tpu.reciprocal %113 : vector<16x1xf32> -> vector<16x1xf32>
    %115 = vector.broadcast %114 : vector<16x1xf32> to vector<16x16xf32>
    %116 = arith.mulf %111, %115 : vector<16x16xf32>
    %c0_52 = arith.constant 0 : index
    %c4 = arith.constant 4 : index
    %c0_53 = arith.constant 0 : index
    %c0_54 = arith.constant 0 : index
    %117 = vector.load %arg10[%c0_52, %c4, %c0_53, %c0_54] : memref<1x8x16x16xf32, #tpu.memory_space<vmem>>, vector<1x1x16x16xf32>
    %118 = vector.shape_cast %117 : vector<1x1x16x16xf32> to vector<16x16xf32>
    %119 = vector.shape_cast %116 : vector<16x16xf32> to vector<1x1x16x16xf32>
    tpu.vector_store %arg10[%c0_52, %c4, %c0_53, %c0_54], %119 {strides = array<i32>} : memref<1x8x16x16xf32, #tpu.memory_space<vmem>>, vector<1x1x16x16xf32>,
    %cst_55 = arith.constant dense<0.000000e+00> : vector<16x32xf32>
    %120 = tpu.matmul %116, %103, %cst_55 {dimension_numbers = #tpu.dot_dimension_numbers<[1], [0], [0], [1], [0, 0, 1, 1], [], []>} : vector<16x16xf32>, vector<16x32xf32>, vector<16x32xf32> -> vector<16x32xf32>
    %121 = vector.extract_strided_slice %20 {offsets = [0, 160], sizes = [16, 32], strides = [1, 1]} : vector<16x256xf32> to vector<16x32xf32>
    %122 = vector.extract_strided_slice %13 {offsets = [0, 160], sizes = [16, 32], strides = [1, 1]} : vector<16x256xf32> to vector<16x32xf32>
    %123 = vector.extract_strided_slice %18 {offsets = [0, 160], sizes = [16, 32], strides = [1, 1]} : vector<16x256xf32> to vector<16x32xf32>
    %cst_56 = arith.constant dense<0.000000e+00> : vector<16x16xf32>
    %124 = tpu.matmul %121, %122, %cst_56 {dimension_numbers = #tpu.dot_dimension_numbers<[1], [1], [0], [0], [0, 0, 1, 0], [], []>} : vector<16x32xf32>, vector<16x32xf32>, vector<16x16xf32> -> vector<16x16xf32>
    %125 = vector.broadcast %3 : vector<1x16xf32> to vector<16x16xf32>
    %126 = arith.addf %124, %125 : vector<16x16xf32>
    %cst_57 = arith.constant dense<0xFF800000> : vector<16xf32>
    %127 = vector.multi_reduction <maximumf>, %126, %cst_57 [1] : vector<16x16xf32> to vector<16xf32>
    %128 = vector.shape_cast %127 : vector<16xf32> to vector<16x1xf32>
    %129 = vector.broadcast %128 : vector<16x1xf32> to vector<16x16xf32>
    %130 = arith.subf %126, %129 : vector<16x16xf32>
    %131 = math.exp %130 : vector<16x16xf32>
    %cst_58 = arith.constant dense<0.000000e+00> : vector<16xf32>
    %132 = vector.multi_reduction <add>, %131, %cst_58 [1] : vector<16x16xf32> to vector<16xf32>
    %133 = vector.shape_cast %132 : vector<16xf32> to vector<16x1xf32>
    %134 = tpu.reciprocal %133 : vector<16x1xf32> -> vector<16x1xf32>
    %135 = vector.broadcast %134 : vector<16x1xf32> to vector<16x16xf32>
    %136 = arith.mulf %131, %135 : vector<16x16xf32>
    %c0_59 = arith.constant 0 : index
    %c5 = arith.constant 5 : index
    %c0_60 = arith.constant 0 : index
    %c0_61 = arith.constant 0 : index
    %137 = vector.load %arg10[%c0_59, %c5, %c0_60, %c0_61] : memref<1x8x16x16xf32, #tpu.memory_space<vmem>>, vector<1x1x16x16xf32>
    %138 = vector.shape_cast %137 : vector<1x1x16x16xf32> to vector<16x16xf32>
    %139 = vector.shape_cast %136 : vector<16x16xf32> to vector<1x1x16x16xf32>
    tpu.vector_store %arg10[%c0_59, %c5, %c0_60, %c0_61], %139 {strides = array<i32>} : memref<1x8x16x16xf32, #tpu.memory_space<vmem>>, vector<1x1x16x16xf32>,
    %cst_62 = arith.constant dense<0.000000e+00> : vector<16x32xf32>
    %140 = tpu.matmul %136, %123, %cst_62 {dimension_numbers = #tpu.dot_dimension_numbers<[1], [0], [0], [1], [0, 0, 1, 1], [], []>} : vector<16x16xf32>, vector<16x32xf32>, vector<16x32xf32> -> vector<16x32xf32>
    %141 = vector.extract_strided_slice %20 {offsets = [0, 192], sizes = [16, 32], strides = [1, 1]} : vector<16x256xf32> to vector<16x32xf32>
    %142 = vector.extract_strided_slice %13 {offsets = [0, 192], sizes = [16, 32], strides = [1, 1]} : vector<16x256xf32> to vector<16x32xf32>
    %143 = vector.extract_strided_slice %18 {offsets = [0, 192], sizes = [16, 32], strides = [1, 1]} : vector<16x256xf32> to vector<16x32xf32>
    %cst_63 = arith.constant dense<0.000000e+00> : vector<16x16xf32>
    %144 = tpu.matmul %141, %142, %cst_63 {dimension_numbers = #tpu.dot_dimension_numbers<[1], [1], [0], [0], [0, 0, 1, 0], [], []>} : vector<16x32xf32>, vector<16x32xf32>, vector<16x16xf32> -> vector<16x16xf32>
    %145 = vector.broadcast %3 : vector<1x16xf32> to vector<16x16xf32>
    %146 = arith.addf %144, %145 : vector<16x16xf32>
    %cst_64 = arith.constant dense<0xFF800000> : vector<16xf32>
    %147 = vector.multi_reduction <maximumf>, %146, %cst_64 [1] : vector<16x16xf32> to vector<16xf32>
    %148 = vector.shape_cast %147 : vector<16xf32> to vector<16x1xf32>
    %149 = vector.broadcast %148 : vector<16x1xf32> to vector<16x16xf32>
    %150 = arith.subf %146, %149 : vector<16x16xf32>
    %151 = math.exp %150 : vector<16x16xf32>
    %cst_65 = arith.constant dense<0.000000e+00> : vector<16xf32>
    %152 = vector.multi_reduction <add>, %151, %cst_65 [1] : vector<16x16xf32> to vector<16xf32>
    %153 = vector.shape_cast %152 : vector<16xf32> to vector<16x1xf32>
    %154 = tpu.reciprocal %153 : vector<16x1xf32> -> vector<16x1xf32>
    %155 = vector.broadcast %154 : vector<16x1xf32> to vector<16x16xf32>
    %156 = arith.mulf %151, %155 : vector<16x16xf32>
    %c0_66 = arith.constant 0 : index
    %c6 = arith.constant 6 : index
    %c0_67 = arith.constant 0 : index
    %c0_68 = arith.constant 0 : index
    %157 = vector.load %arg10[%c0_66, %c6, %c0_67, %c0_68] : memref<1x8x16x16xf32, #tpu.memory_space<vmem>>, vector<1x1x16x16xf32>
    %158 = vector.shape_cast %157 : vector<1x1x16x16xf32> to vector<16x16xf32>
    %159 = vector.shape_cast %156 : vector<16x16xf32> to vector<1x1x16x16xf32>
    tpu.vector_store %arg10[%c0_66, %c6, %c0_67, %c0_68], %159 {strides = array<i32>} : memref<1x8x16x16xf32, #tpu.memory_space<vmem>>, vector<1x1x16x16xf32>,
    %cst_69 = arith.constant dense<0.000000e+00> : vector<16x32xf32>
    %160 = tpu.matmul %156, %143, %cst_69 {dimension_numbers = #tpu.dot_dimension_numbers<[1], [0], [0], [1], [0, 0, 1, 1], [], []>} : vector<16x16xf32>, vector<16x32xf32>, vector<16x32xf32> -> vector<16x32xf32>
    %161 = vector.extract_strided_slice %20 {offsets = [0, 224], sizes = [16, 32], strides = [1, 1]} : vector<16x256xf32> to vector<16x32xf32>
    %162 = vector.extract_strided_slice %13 {offsets = [0, 224], sizes = [16, 32], strides = [1, 1]} : vector<16x256xf32> to vector<16x32xf32>
    %163 = vector.extract_strided_slice %18 {offsets = [0, 224], sizes = [16, 32], strides = [1, 1]} : vector<16x256xf32> to vector<16x32xf32>
    %cst_70 = arith.constant dense<0.000000e+00> : vector<16x16xf32>
    %164 = tpu.matmul %161, %162, %cst_70 {dimension_numbers = #tpu.dot_dimension_numbers<[1], [1], [0], [0], [0, 0, 1, 0], [], []>} : vector<16x32xf32>, vector<16x32xf32>, vector<16x16xf32> -> vector<16x16xf32>
    %165 = vector.broadcast %3 : vector<1x16xf32> to vector<16x16xf32>
    %166 = arith.addf %164, %165 : vector<16x16xf32>
    %cst_71 = arith.constant dense<0xFF800000> : vector<16xf32>
    %167 = vector.multi_reduction <maximumf>, %166, %cst_71 [1] : vector<16x16xf32> to vector<16xf32>
    %168 = vector.shape_cast %167 : vector<16xf32> to vector<16x1xf32>
    %169 = vector.broadcast %168 : vector<16x1xf32> to vector<16x16xf32>
    %170 = arith.subf %166, %169 : vector<16x16xf32>
    %171 = math.exp %170 : vector<16x16xf32>
    %cst_72 = arith.constant dense<0.000000e+00> : vector<16xf32>
    %172 = vector.multi_reduction <add>, %171, %cst_72 [1] : vector<16x16xf32> to vector<16xf32>
    %173 = vector.shape_cast %172 : vector<16xf32> to vector<16x1xf32>
    %174 = tpu.reciprocal %173 : vector<16x1xf32> -> vector<16x1xf32>
    %175 = vector.broadcast %174 : vector<16x1xf32> to vector<16x16xf32>
    %176 = arith.mulf %171, %175 : vector<16x16xf32>
    %c0_73 = arith.constant 0 : index
    %c7 = arith.constant 7 : index
    %c0_74 = arith.constant 0 : index
    %c0_75 = arith.constant 0 : index
    %177 = vector.load %arg10[%c0_73, %c7, %c0_74, %c0_75] : memref<1x8x16x16xf32, #tpu.memory_space<vmem>>, vector<1x1x16x16xf32>
    %178 = vector.shape_cast %177 : vector<1x1x16x16xf32> to vector<16x16xf32>
    %179 = vector.shape_cast %176 : vector<16x16xf32> to vector<1x1x16x16xf32>
    tpu.vector_store %arg10[%c0_73, %c7, %c0_74, %c0_75], %179 {strides = array<i32>} : memref<1x8x16x16xf32, #tpu.memory_space<vmem>>, vector<1x1x16x16xf32>,
    %cst_76 = arith.constant dense<0.000000e+00> : vector<16x32xf32>
    %180 = tpu.matmul %176, %163, %cst_76 {dimension_numbers = #tpu.dot_dimension_numbers<[1], [0], [0], [1], [0, 0, 1, 1], [], []>} : vector<16x16xf32>, vector<16x32xf32>, vector<16x32xf32> -> vector<16x32xf32>
    %181 = tpu.concatenate %40, %60, %80, %100, %120, %140, %160, %180 in 1 : vector<16x32xf32>, vector<16x32xf32>, vector<16x32xf32>, vector<16x32xf32>, vector<16x32xf32>, vector<16x32xf32>, vector<16x32xf32>, vector<16x32xf32> -> vector<16x256xf32>
    %c0_77 = arith.constant 0 : index
    %c0_78 = arith.constant 0 : index
    %c0_79 = arith.constant 0 : index
    %182 = vector.load %arg9[%c0_77, %c0_78, %c0_79] : memref<1x16x256xf32, #tpu.memory_space<vmem>>, vector<1x16x256xf32>
    %183 = vector.shape_cast %182 : vector<1x16x256xf32> to vector<16x256xf32>
    %184 = vector.shape_cast %181 : vector<16x256xf32> to vector<1x16x256xf32>
    tpu.vector_store %arg9[%c0_77, %c0_78, %c0_79], %184 {strides = array<i32>} : memref<1x16x256xf32, #tpu.memory_space<vmem>>, vector<1x16x256xf32>,
    return
  }
  func.func @transform_0(%arg0: i32) -> (i32, i32, i32) {
    %c0_i32 = arith.constant 0 : i32
    %c0_i32_0 = arith.constant 0 : i32
    %c0_i32_1 = arith.constant 0 : i32
    return %arg0, %c0_i32, %c0_i32_0 : i32, i32, i32
  }
  func.func @transform_1(%arg0: i32) -> (i32, i32) {
    %c0_i32 = arith.constant 0 : i32
    %c0_i32_0 = arith.constant 0 : i32
    %c0_i32_1 = arith.constant 0 : i32
    return %c0_i32, %c0_i32_0 : i32, i32
  }
  func.func @transform_2(%arg0: i32) -> (i32, i32) {
    %c0_i32 = arith.constant 0 : i32
    %c0_i32_0 = arith.constant 0 : i32
    %c0_i32_1 = arith.constant 0 : i32
    return %c0_i32, %c0_i32_0 : i32, i32
  }
  func.func @transform_3(%arg0: i32) -> (i32, i32) {
    %c0_i32 = arith.constant 0 : i32
    %c0_i32_0 = arith.constant 0 : i32
    %c0_i32_1 = arith.constant 0 : i32
    return %c0_i32, %c0_i32_0 : i32, i32
  }
  func.func @transform_4(%arg0: i32) -> (i32, i32) {
    %c0_i32 = arith.constant 0 : i32
    %c0_i32_0 = arith.constant 0 : i32
    %c0_i32_1 = arith.constant 0 : i32
    return %c0_i32, %c0_i32_0 : i32, i32
  }
  func.func @transform_5(%arg0: i32) -> (i32, i32) {
    %c0_i32 = arith.constant 0 : i32
    %c0_i32_0 = arith.constant 0 : i32
    %c0_i32_1 = arith.constant 0 : i32
    return %c0_i32, %c0_i32_0 : i32, i32
  }
  func.func @transform_6(%arg0: i32) -> (i32, i32) {
    %c0_i32 = arith.constant 0 : i32
    %c0_i32_0 = arith.constant 0 : i32
    %c0_i32_1 = arith.constant 0 : i32
    return %c0_i32, %c0_i32_0 : i32, i32
  }
  func.func @transform_7(%arg0: i32) -> (i32, i32, i32) {
    %c0_i32 = arith.constant 0 : i32
    %c0_i32_0 = arith.constant 0 : i32
    %c0_i32_1 = arith.constant 0 : i32
    return %arg0, %c0_i32, %c0_i32_0 : i32, i32, i32
  }
  func.func @transform_8(%arg0: i32) -> (i32, i32, i32) {
    %c0_i32 = arith.constant 0 : i32
    %c0_i32_0 = arith.constant 0 : i32
    %c0_i32_1 = arith.constant 0 : i32
    return %arg0, %c0_i32, %c0_i32_0 : i32, i32, i32
  }
  func.func @transform_9(%arg0: i32) -> (i32, i32, i32, i32) {
    %c0_i32 = arith.constant 0 : i32
    %c0_i32_0 = arith.constant 0 : i32
    %c0_i32_1 = arith.constant 0 : i32
    %c0_i32_2 = arith.constant 0 : i32
    return %arg0, %c0_i32, %c0_i32_0, %c0_i32_1 : i32, i32, i32, i32
  }
}

</mosaic_0001>

<bundles_post_ra>
// kernel: tpu_custom_call.1
= control target key start
LH: loop header
LB: loop body
LE: loop exit
PB: predicated region body
PF: predicated region fallthrough
CT: control target
= control target key end

     0   :  { %s4089_s0 = inlined_call_operand.hbm [shape: f32[2,16,256], index: 0, kind: input, shape index: {}]   ;;  %s4090_s1 = inlined_call_operand.hbm [shape: f32[256,256], index: 1, kind: input, shape index: {}]   ;;  %s4091_s2 = inlined_call_operand.hbm [shape: f32[256,256], index: 2, kind: input, shape index: {}]   ;;  %s4092_s3 = inlined_call_operand.hbm [shape: f32[256,256], index: 3, kind: input, shape index: {}]   ;;  %s4093_s4 = inlined_call_operand.vmem [shape: f32[1,256], index: 4, kind: input, shape index: {}]   ;;  %s4094_s5 = inlined_call_operand.vmem [shape: f32[1,256], index: 5, kind: input, shape index: {}]   ;;  %s4095_s6 = inlined_call_operand.vmem [shape: f32[1,256], index: 6, kind: input, shape index: {}]   ;;  %s4096_s7 = inlined_call_operand.vmem [shape: f32[2,1,16], index: 7, kind: input, shape index: {}]   ;;  %s4097_s8 = inlined_call_operand.hbm [shape: f32[2,16,256], index: 8, kind: output, shape index: {0}]   ;;  %s4098_s9 = inlined_call_operand.hbm [shape: f32[2,8,16,16], index: 9, kind: output, shape index: {1}]  }
   0x1   :  { %4105 = sst [smem:[#allocation18_spill]] %s4090_s1 }
   0x2   :  { %4106 = sst [smem:[#allocation19_spill]] %s4091_s2 }
   0x3   :  { %4107 = sst [smem:[#allocation20_spill]] %s4092_s3 }
   0x4   :  { %15 = vsyncpa [#allocation3], 0 }
   0x5   :  { %17 = vsyncpa [#allocation3 + $0x1], 0 }
   0x6   :  { %18 = vsyncpa [#allocation6], 0 }
   0x7   :  { %19 = vsyncpa [#allocation9], 0 }
   0x8   :  { %20 = vsyncpa [#allocation4], 0 }
   0x9   :  { %22 = vsyncpa [#allocation4 + $0x1], 0 }
   0xa   :  { %23 = vsyncpa [#allocation12], 0 }
   0xb   :  { %25 = vsyncpa [#allocation12 + $0x1], 0  ;;  %s3443_s30 = smov 0   ;;  %s3445_s10 = smov 0  }
   0xc   :  { %s3447_s11 = smov 0   ;;  %s3449_s12 = smov 0  }
   0xd LB: > { %s3464_s13 = sadd.s32 4294967295, %s3376_s12   ;;  %s2747_s14 = sadd.s32 4294967294, %s3376_s12   ;;  %s3376_s12 = sphi %s3449_s12, %s4131_s12   ;;  %s3372_s11 = sphi %s3447_s11, %s4130_s11   ;;  %s3368_s10 = sphi %s3445_s10, %s4129_s10   ;;  %s3364_s30 = sphi %s3443_s30, %s4128_s30  }
   0xe   : > { %p51_p0 = scmp.ne.s32.totalorder %s3368_s10, %s3364_s30  ;;  %p4099_p1 = scmp.eq.s32.totalorder %s3464_s13, 0 }
   0xf   : > { %p227_p2 = scmp.eq.s32.totalorder %s3464_s13, 1  ;;  %p233_p3 = scmp.eq.s32.totalorder %s2747_s14, 1 }
  0x10   : > { %p3473_p4 = por %p4099_p1, %p51_p0  ;;  %p2748_p5 = scmp.ge.s32.totalorder %s3376_s12, 1 }
  0x11   : > { %p3478_p6 = por %p233_p3, %p51_p0  ;;  %p266_p7 = scmp.lt.s32.totalorder %s3376_s12, 3 }
  0x12   : > { %s4108_s15 = scalar_select %p3473_p4, 1, 0 }
  0x13   : > { %s4109_s16 = scalar_select %p3478_p6, 1, 0 }
  0x14   : > { %p3483_p8 = pnand %p2748_p5, %p266_p7  ;;  %s3378_s18 = smov [#allocation5]  }
  0x15   : > { %s278_s19 = sshll.u32 %s3378_s18, 4  ;;  %s3379_s21 = smov [#allocation7]   ;;  %s279_s19 = int_to_ptr.vmem [resolvable:$true] %s278_s19 }
  0x16   : > { %s4110_s17 = scalar_select %p3483_p8, 1, 0 }
  0x17   : > { %p3031_p9 = pneg %p3483_p8  ;;  %s291_s22 = sshll.u32 %s3379_s21, 4  ;;  %s292_s22 = int_to_ptr.vmem [resolvable:$true] %s291_s22 }
  0x18   : > { %s3380_s23 = smov [#allocation8]   ;;  %s3179_s25 = scalar_lea.vmem %s279_s19, 8192 }
  0x19   : > { %p3492_p11 = pnand %p3031_p9, %p4099_p1  ;;  %s304_s24 = sshll.u32 %s3380_s23, 4  ;;  %s305_s24 = int_to_ptr.vmem [resolvable:$true] %s304_s24 }
  0x1a   : > { %p3180_p13 = scmp.ne.s32.totalorder %s279_s19, %s3179_s25  ;;  %p3187_p5 = scmp.lt.s32.totalorder %s279_s19, %s279_s19 }
  0x1b   : > { %p3170_p12 = pneg %p3492_p11  ;;  %p3188_p7 = scmp.lt.s32.totalorder %s3179_s25, %s3179_s25 }
  0x1d   : > { %p3182_p0 = pnand %p3180_p13, %p3170_p12  ;;  %p3189_p9 = por %p3188_p7, %p3187_p5 }
  0x1f   : > { %p3183_p3 = pneg %p3182_p0 }
  0x21   : > { %p3190_p10 = pnand %p3189_p9, %p3183_p3 }
  0x23   : > { %3193 = shalt.err (!%p3190_p10)
}
  0x24   : > { %s4100_s26 = smov 256   ;;  %s4101_s27 = smov 16  }
  0x25   : > { %s4112_s1 = sld [smem:[#allocation18_spill]]  ;;  %s3205_s14 = scalar_lea.vmem %s292_s22, 8192 }
  0x26   : > { %p3206_p13 = scmp.ne.s32.totalorder %s292_s22, %s3205_s14  ;;  %p3213_p3 = scmp.lt.s32.totalorder %s292_s22, %s292_s22 }
  0x27   : > { %p3214_p10 = scmp.lt.s32.totalorder %s3205_s14, %s3205_s14 }
  0x28   : > { %p3208_p0 = pnand %p3206_p13, %p3170_p12 }
  0x29   : > { %p3215_p7 = por %p3214_p10, %p3213_p3 }
  0x2a   : > { %p3209_p5 = pneg %p3208_p0 }
  0x2b   : > { %3034 = dma.hbm_to_vmem [thread:$0]  (!%p3492_p11), %s4112_s1, 8192, %s279_s19, [#allocation6], %s4100_s26, %s4100_s26, %s4101_s27  }
  0x2c   : > { %p3216_p9 = pnand %p3215_p7, %p3209_p5 }
  0x2e   : > { %3219 = shalt.err (!%p3216_p9)
}
  0x2f   : > { %s4113_s2 = sld [smem:[#allocation19_spill]]  ;;  %s3231_s19 = scalar_lea.vmem %s305_s24, 8192 }
  0x30   : > { %p3232_p1 = scmp.ne.s32.totalorder %s305_s24, %s3231_s19  ;;  %p3239_p3 = scmp.lt.s32.totalorder %s305_s24, %s305_s24 }
  0x31   : > { %p3240_p5 = scmp.lt.s32.totalorder %s3231_s19, %s3231_s19 }
  0x32   : > { %p3234_p13 = pnand %p3232_p1, %p3170_p12 }
  0x33   : > { %p3241_p10 = por %p3240_p5, %p3239_p3 }
  0x34   : > { %p3235_p0 = pneg %p3234_p13 }
  0x35   : > { %3037 = dma.hbm_to_vmem [thread:$0]  (!%p3492_p11), %s4113_s2, 8192, %s292_s22, [#allocation6], %s4100_s26, %s4100_s26, %s4101_s27  }
  0x36   : > { %p3242_p7 = pnand %p3241_p10, %p3235_p0 }
  0x38   : > { %3245 = shalt.err (!%p3242_p7)
}
  0x39   : > { %s4114_s3 = sld [smem:[#allocation20_spill]]  ;;  %s3532_s22 = sadd.s32 1, %s3376_s12  }
  0x3a   : > { %s35_s20 = ssub.s32 %s3376_s12, %s3532_s22  ;;  %s38_s28 = sadd.s32 1, %s3372_s11 }
  0x3b   : > { %p36_p1 = scmp.eq.s32.totalorder %s35_s20, 0  ;;  %p45_p12 = scmp.ne.s32.totalorder %s3372_s11, %s3368_s10 }
  0x3c   : > { %p46_p9 = scmp.eq.s32.totalorder %s3376_s12, 0  ;;  %p3055_p13 = scmp.lt.s32.totalorder %s3376_s12, 2 }
  0x3d   : > { %s3542_s29 = scalar_select %p36_p1, %s3372_s11, %s38_s28  }
  0x3e   : > { %p47_p0 = por %p46_p9, %p45_p12  ;;  %p3546_p3 = por %p227_p2, %p45_p12 }
  0x3f   : > { %3040 = dma.hbm_to_vmem [thread:$0]  (!%p3492_p11), %s4114_s3, 8192, %s305_s24, [#allocation9], %s4100_s26, %s4100_s26, %s4101_s27  }
  0x40   : > { %s4115_s14 = scalar_select %p3546_p3, 1, 0 }
  0x41   : > { %s327_s18 = sand.u32 1, %s3372_s11   ;;  %s2834_s21 = sshll.u32 %s3376_s12, 9 }
  0x42   : > { %s2753_s24 = sshll.u32 %s327_s18, 5  ;;  %s3555_s25 = scalar_lea.hbm %s4089_s0, %s2834_s21 }
  0x43   : > { %s331_s20 = scalar_lea.vmem [#allocation2], %s2753_s24  ;;  %p3557_p11 = pnand %p3055_p13, %p47_p0 }
  0x44   : > { %s338_s28 = sshll.u32 %s331_s20, 4  ;;  %s3563_s27 = scalar_lea.sflag [#allocation3], %s327_s18  ;;  %s3561_s28 = int_to_ptr.vmem [resolvable:$true] %s338_s28 }
  0x45   : > { %s3246_s1 = scalar_lea.hbm %s3555_s25, 512  ;;  %p3248_p5 = pneg %p3557_p11 }
  0x46   : > { %p3247_p2 = scmp.ne.s32.totalorder %s3555_s25, %s3246_s1  ;;  %s3251_s24 = scalar_lea.hbm %s4089_s0, 1024 }
  0x47   : > { %p3252_p1 = scmp.lt.s32.totalorder %s3555_s25, %s4089_s0  ;;  %p3253_p12 = scmp.lt.s32.totalorder %s3251_s24, %s3246_s1 }
  0x48   : > { %p3249_p10 = pnand %p3248_p5, %p3247_p2 }
  0x49   : > { %p3254_p9 = por %p3253_p12, %p3252_p1 }
  0x4a   : > { %p3250_p7 = pneg %p3249_p10 }
  0x4c   : > { %p3255_p13 = pnand %p3254_p9, %p3250_p7 }
  0x4e   : > { %3258 = shalt.err (!%p3255_p13)
}
  0x4f   : > { %s3259_s18 = scalar_lea.vmem %s3561_s28, 512  ;;  %s3383_s2 = smov [#allocation2]  }
  0x50   : > { %p3260_p0 = scmp.ne.s32.totalorder %s3561_s28, %s3259_s18  ;;  %s3264_s3 = sshll.u32 %s3383_s2, 4  ;;  %s3265_s3 = int_to_ptr.vmem [resolvable:$false] %s3264_s3 }
  0x51   : > { %s3266_s21 = scalar_lea.vmem %s3265_s3, 1024  ;;  %p3267_p10 = scmp.lt.s32.totalorder %s3561_s28, %s3265_s3 }
  0x52   : > { %p3262_p6 = pnand %p3260_p0, %p3248_p5  ;;  %p3268_p3 = scmp.lt.s32.totalorder %s3266_s21, %s3259_s18 }
  0x54   : > { %p3263_p2 = pneg %p3262_p6  ;;  %p3269_p4 = por %p3268_p3, %p3267_p10 }
  0x56   : > { %p3270_p8 = pnand %p3269_p4, %p3263_p2 }
  0x58   : > { %3273 = shalt.err (!%p3270_p8)
}
  0x59   : > { %s4117_s1 = smov 16   ;;  %s4118_s19 = smov 256  }
  0x5a   : > { %3044 = dma.hbm_to_vmem [thread:$0]  (!%p3557_p11), %s3555_s25, 512, %s3561_s28, %s3563_s27, %s4118_s19, %s4118_s19, %s4117_s1  }
  0x5b   : > { %p4119_p6 = scmp.ne.s32.totalorder %s4110_s17, 0 }
  0x5c   : > { %s3590_s2 = sand.u32 (!%p4119_p6), 1, %s3368_s10   ;;  %p4120_p4 = scmp.ne.s32.totalorder (!%p4119_p6), %s4108_s15, 0 }
  0x5d   : > { %356 = sbr.rel (%p4119_p6) target bundleno = 4348 (0x10fc), region = 52  ;;  %s2757_s3 = sshll.u32 (!%p4119_p6), %s3590_s2, 5 }
  0x5e   : > { %s359_s24 = scalar_lea.sflag (!%p4119_p6), [#allocation3], %s3590_s2  ;;  %s3596_s26 = scalar_lea.vmem (!%p4119_p6), [#allocation2], %s2757_s3 }
  0x62   : > { %3343 = dma.done.wait (%p4120_p4), %s359_s24, 512  }
  0x63   : > { %3345 = vsyncadd (%p4120_p4), %s359_s24, 4294966784  ;;  %p4121_p8 = scmp.eq.s32.totalorder %s3464_s13, 0 }
  0x65   : > { %3347 = dma.done.wait (%p4121_p8), [#allocation6], 16384   ;;  %p4122_p3 = pmov %p4121_p8 }
  0x67   : > { %3349 = vsyncadd (%p4122_p3), [#allocation6], 4294950912  ;;  %p4123_p11 = pmov %p4122_p3 }
  0x68   : > { %p4124_p5 = pmov %p4122_p3 }
  0x69   : > { %3351 = dma.done.wait (%p4123_p11), [#allocation9], 8192  }
  0x6a   : > { %3353 = vsyncadd (%p4124_p5), [#allocation9], 4294959104  ;;  %v609_v0 = vld [vmem:[#allocation7 + $0xf8] sm:$0xff]  ;;  %v608_v1 = vld [vmem:[#allocation7 + $0xf0] sm:$0xff]  ;;  %s3384_s28 = smov 96   ;;  %vm894_vm0 = vcmask 261120  }
  0x6b   : > { %v607_v2 = vld [vmem:[#allocation7 + $0xe8] sm:$0xff]  ;;  %654 = vmatprep.subr.mxu1 %v609_v0  ;;  %v606_v3 = vld [vmem:[#allocation7 + $0xe0] sm:$0xff]  ;;  %v456_v4 = vld [vmem:[#allocation5 + $0xf8] sm:$0xff]  ;;  %p417_p7 = scmp.lt.s32.totalorder %s3464_s13, 1  ;;  %vm982_vm1 = vcmask 130048   ;;  %s2762_s24 = sshll.u32 %s3590_s2, 7 }
  0x6c   : > { %655 = vmatpush1.msra.mxu1 %v608_v1  ;;  %v605_v5 = vld [vmem:[#allocation7 + $0xd8] sm:$0xff]  ;;  %501 = vmatprep.subr.mxu0 %v456_v4  ;;  %v455_v6 = vld [vmem:[#allocation5 + $0xf0] sm:$0xff]  ;;  %v454_v8 = vld [vmem:[#allocation5 + $0xe8] sm:$0xff]  ;;  %s3385_s15 = smov 64   ;;  %s3386_s17 = smov 32   ;;  %vm2553_vm2 = vcmask 523264  }
  0x6d   : > { %656 = vmatprep.subr.mxu1 %v607_v2  ;;  %v604_v7 = vld [vmem:[#allocation7 + $0xd0] sm:$0xff]  ;;  %502 = vmatpush1.msra.mxu0 %v455_v6  ;;  %v453_v9 = vld [vmem:[#allocation5 + $0xe0] sm:$0xff]  ;;  %v603_v10 = vld [vmem:[#allocation7 + $0xc8] sm:$0xff]  ;;  %s418_s23 = scalar_select %p417_p7, %s3464_s13, 1  ;;  %vm2556_vm3 = vcmask 785408  }
  0x6e   : > { %657 = vmatpush1.msra.mxu1 %v606_v3  ;;  %503 = vmatprep.subr.mxu0 %v454_v8  ;;  %v452_v11 = vld [vmem:[#allocation5 + $0xd8] sm:$0xff]  ;;  %v602_v12 = vld [vmem:[#allocation7 + $0xc0] sm:$0xff]  ;;  %v451_v13 = vld [vmem:[#allocation5 + $0xd0] sm:$0xff]  ;;  %s3975_s27 = scalar_lea.vmem [#allocation10], %s2757_s3  ;;  %s2836_s3 = sshll.u32 %s3464_s13, 11 }
  0x6f   : > { %658 = vmatprep.subr.mxu1 %v605_v5  ;;  %504 = vmatpush1.msra.mxu0 %v453_v9  ;;  %v450_v14 = vld [vmem:[#allocation5 + $0xc8] sm:$0xff]  ;;  %v601_v15 = vld [vmem:[#allocation7 + $0xb8] sm:$0xff]  ;;  %v449_v16 = vld [vmem:[#allocation5 + $0xc0] sm:$0xff]  ;;  %s419_s21 = scalar_lea.vmem %s4096_s7, %s418_s23  ;;  %s4004_s20 = scalar_lea.hbm %s4098_s9, %s2836_s3 }
  0x70   : > { %659 = vmatpush1.msra.mxu1 %v604_v7  ;;  %505 = vmatprep.subr.mxu0 %v452_v11  ;;  %v600_v17 = vld [vmem:[#allocation7 + $0xb0] sm:$0xff]  ;;  %v448_v18 = vld [vmem:[#allocation5 + $0xb8] sm:$0xff]  ;;  %v599_v19 = vld [vmem:[#allocation7 + $0xa8] sm:$0xff]  ;;  %p4125_p12 = scmp.ne.s32.totalorder %s4115_s14, 0  ;;  %s3387_s19 = smov [#allocation11]  }
  0x71   : > { %660 = vmatprep.subr.mxu1 %v603_v10  ;;  %506 = vmatpush1.msra.mxu0 %v451_v13  ;;  %v447_v20 = vld [vmem:[#allocation5 + $0xb0] sm:$0xff]  ;;  %v598_v21 = vld [vmem:[#allocation7 + $0xa0] sm:$0xff]  ;;  %v446_v22 = vld [vmem:[#allocation5 + $0xa8] sm:$0xff] }
  0x72   : > { %661 = vmatpush1.msra.mxu1 %v602_v12  ;;  %507 = vmatprep.subr.mxu0 %v450_v14  ;;  %v597_v23 = vld [vmem:[#allocation7 + $0x98] sm:$0xff]  ;;  %v445_v24 = vld [vmem:[#allocation5 + $0xa0] sm:$0xff]  ;;  %v596_v25 = vld [vmem:[#allocation7 + $0x90] sm:$0xff] }
  0x73   : > { %662 = vmatprep.subr.mxu1 %v601_v15  ;;  %508 = vmatpush1.msra.mxu0 %v449_v16  ;;  %v444_v26 = vld [vmem:[#allocation5 + $0x98] sm:$0xff]  ;;  %v595_v27 = vld [vmem:[#allocation7 + $0x88] sm:$0xff]  ;;  %v443_v28 = vld [vmem:[#allocation5 + $0x90] sm:$0xff] }
  0x74   : > { %663 = vmatpush1.msra.mxu1 %v600_v17  ;;  %509 = vmatprep.subr.mxu0 %v448_v18  ;;  %v594_v29 = vld [vmem:[#allocation7 + $0x80] sm:$0xff]  ;;  %v442_v30 = vld [vmem:[#allocation5 + $0x88] sm:$0xff]  ;;  %v593_v31 = vld [vmem:[#allocation7 + $0x78] sm:$0xff] }
  0x75   : > { %664 = vmatprep.subr.mxu1 %v599_v19  ;;  %510 = vmatpush1.msra.mxu0 %v447_v20  ;;  %v441_v32 = vld [vmem:[#allocation5 + $0x80] sm:$0xff]  ;;  %v592_v33 = vld [vmem:[#allocation7 + $0x70] sm:$0xff]  ;;  %v440_v34 = vld [vmem:[#allocation5 + $0x78] sm:$0xff] }
  0x76   : > { %665 = vmatpush1.msra.mxu1 %v598_v21  ;;  %511 = vmatprep.subr.mxu0 %v446_v22  ;;  %v591_v35 = vld [vmem:[#allocation7 + $0x68] sm:$0xff]  ;;  %v439_v36 = vld [vmem:[#allocation5 + $0x70] sm:$0xff]  ;;  %v590_v37 = vld [vmem:[#allocation7 + $0x60] sm:$0xff] }
  0x77   : > { %666 = vmatprep.subr.mxu1 %v597_v23  ;;  %512 = vmatpush1.msra.mxu0 %v445_v24  ;;  %v438_v38 = vld [vmem:[#allocation5 + $0x68] sm:$0xff]  ;;  %v589_v39 = vld [vmem:[#allocation7 + $0x58] sm:$0xff]  ;;  %v437_v40 = vld [vmem:[#allocation5 + $0x60] sm:$0xff] }
  0x78   : > { %667 = vmatpush1.msra.mxu1 %v596_v25  ;;  %513 = vmatprep.subr.mxu0 %v444_v26  ;;  %v588_v41 = vld [vmem:[#allocation7 + $0x50] sm:$0xff]  ;;  %v436_v42 = vld [vmem:[#allocation5 + $0x58] sm:$0xff]  ;;  %v587_v43 = vld [vmem:[#allocation7 + $0x48] sm:$0xff] }
  0x79   : > { %668 = vmatprep.subr.mxu1 %v595_v27  ;;  %514 = vmatpush1.msra.mxu0 %v443_v28  ;;  %v435_v44 = vld [vmem:[#allocation5 + $0x50] sm:$0xff]  ;;  %v586_v45 = vld [vmem:[#allocation7 + $0x40] sm:$0xff]  ;;  %v434_v46 = vld [vmem:[#allocation5 + $0x48] sm:$0xff] }
  0x7a   : > { %669 = vmatpush1.msra.mxu1 %v594_v29  ;;  %515 = vmatprep.subr.mxu0 %v442_v30  ;;  %v585_v47 = vld [vmem:[#allocation7 + $0x38] sm:$0xff]  ;;  %v433_v48 = vld [vmem:[#allocation5 + $0x40] sm:$0xff]  ;;  %v584_v49 = vld [vmem:[#allocation7 + $0x30] sm:$0xff] }
  0x7b   : > { %670 = vmatprep.subr.mxu1 %v593_v31  ;;  %516 = vmatpush1.msra.mxu0 %v441_v32  ;;  %v432_v50 = vld [vmem:[#allocation5 + $0x38] sm:$0xff]  ;;  %v583_v51 = vld [vmem:[#allocation7 + $0x28] sm:$0xff]  ;;  %v431_v52 = vld [vmem:[#allocation5 + $0x30] sm:$0xff] }
  0x7c   : > { %671 = vmatpush1.msra.mxu1 %v592_v33  ;;  %517 = vmatprep.subr.mxu0 %v440_v34  ;;  %v582_v53 = vld [vmem:[#allocation7 + $0x20] sm:$0xff]  ;;  %v430_v54 = vld [vmem:[#allocation5 + $0x28] sm:$0xff]  ;;  %v581_v55 = vld [vmem:[#allocation7 + $0x18] sm:$0xff] }
  0x7d   : > { %672 = vmatprep.subr.mxu1 %v591_v35  ;;  %518 = vmatpush1.msra.mxu0 %v439_v36  ;;  %v429_v56 = vld [vmem:[#allocation5 + $0x20] sm:$0xff]  ;;  %v580_v57 = vld [vmem:[#allocation7 + $0x10] sm:$0xff]  ;;  %v428_v58 = vld [vmem:[#allocation5 + $0x18] sm:$0xff] }
  0x7e   : > { %673 = vmatpush1.msra.mxu1 %v590_v37  ;;  %519 = vmatprep.subr.mxu0 %v438_v38  ;;  %v579_v59 = vld [vmem:[#allocation7 + $0x8] sm:$0xff]  ;;  %v427_v60 = vld [vmem:[#allocation5 + $0x10] sm:$0xff]  ;;  %v578_v61 = vld [vmem:[#allocation7] sm:$0xff] }
  0x7f   : > { %674 = vmatprep.subr.mxu1 %v589_v39  ;;  %520 = vmatpush1.msra.mxu0 %v437_v40  ;;  %v426_v62 = vld [vmem:[#allocation5 + $0x8] sm:$0xff]  ;;  %v641_v63 = vld [vmem:[#allocation7 + $0x1f8] sm:$0xff]  ;;  %v425_v0 = vld [vmem:[#allocation5] sm:$0xff] }
  0x80   : > { %675 = vmatpush1.msra.mxu1 %v588_v41  ;;  %521 = vmatprep.subr.mxu0 %v436_v42  ;;  %v640_v1 = vld [vmem:[#allocation7 + $0x1f0] sm:$0xff]  ;;  %v488_v2 = vld [vmem:[#allocation5 + $0x1f8] sm:$0xff]  ;;  %v639_v3 = vld [vmem:[#allocation7 + $0x1e8] sm:$0xff] }
  0x81   : > { %676 = vmatprep.subr.mxu1 %v587_v43  ;;  %522 = vmatpush1.msra.mxu0 %v435_v44  ;;  %v487_v4 = vld [vmem:[#allocation5 + $0x1f0] sm:$0xff]  ;;  %v638_v5 = vld [vmem:[#allocation7 + $0x1e0] sm:$0xff]  ;;  %v486_v6 = vld [vmem:[#allocation5 + $0x1e8] sm:$0xff] }
  0x82   : > { %677 = vmatpush1.msra.mxu1 %v586_v45  ;;  %523 = vmatprep.subr.mxu0 %v434_v46  ;;  %v637_v7 = vld [vmem:[#allocation7 + $0x1d8] sm:$0xff]  ;;  %v485_v8 = vld [vmem:[#allocation5 + $0x1e0] sm:$0xff]  ;;  %v636_v9 = vld [vmem:[#allocation7 + $0x1d0] sm:$0xff] }
  0x83   : > { %678 = vmatprep.subr.mxu1 %v585_v47  ;;  %524 = vmatpush1.msra.mxu0 %v433_v48  ;;  %v484_v10 = vld [vmem:[#allocation5 + $0x1d8] sm:$0xff]  ;;  %v635_v11 = vld [vmem:[#allocation7 + $0x1c8] sm:$0xff]  ;;  %v483_v12 = vld [vmem:[#allocation5 + $0x1d0] sm:$0xff] }
  0x84   : > { %679 = vmatpush1.msra.mxu1 %v584_v49  ;;  %525 = vmatprep.subr.mxu0 %v432_v50  ;;  %v634_v13 = vld [vmem:[#allocation7 + $0x1c0] sm:$0xff]  ;;  %v482_v14 = vld [vmem:[#allocation5 + $0x1c8] sm:$0xff]  ;;  %v633_v15 = vld [vmem:[#allocation7 + $0x1b8] sm:$0xff] }
  0x85   : > { %680 = vmatprep.subr.mxu1 %v583_v51  ;;  %526 = vmatpush1.msra.mxu0 %v431_v52  ;;  %v481_v16 = vld [vmem:[#allocation5 + $0x1c0] sm:$0xff]  ;;  %v632_v17 = vld [vmem:[#allocation7 + $0x1b0] sm:$0xff]  ;;  %v480_v18 = vld [vmem:[#allocation5 + $0x1b8] sm:$0xff] }
  0x86   : > { %681 = vmatpush1.msra.mxu1 %v582_v53  ;;  %527 = vmatprep.subr.mxu0 %v430_v54  ;;  %v631_v19 = vld [vmem:[#allocation7 + $0x1a8] sm:$0xff]  ;;  %v479_v20 = vld [vmem:[#allocation5 + $0x1b0] sm:$0xff]  ;;  %v630_v21 = vld [vmem:[#allocation7 + $0x1a0] sm:$0xff] }
  0x87   : > { %682 = vmatprep.subr.mxu1 %v581_v55  ;;  %528 = vmatpush1.msra.mxu0 %v429_v56  ;;  %v478_v22 = vld [vmem:[#allocation5 + $0x1a8] sm:$0xff]  ;;  %v629_v23 = vld [vmem:[#allocation7 + $0x198] sm:$0xff]  ;;  %v477_v24 = vld [vmem:[#allocation5 + $0x1a0] sm:$0xff] }
  0x88   : > { %683 = vmatpush1.msra.mxu1 %v580_v57  ;;  %529 = vmatprep.subr.mxu0 %v428_v58  ;;  %v628_v25 = vld [vmem:[#allocation7 + $0x190] sm:$0xff]  ;;  %v476_v26 = vld [vmem:[#allocation5 + $0x198] sm:$0xff]  ;;  %v627_v27 = vld [vmem:[#allocation7 + $0x188] sm:$0xff] }
  0x89   : > { %684 = vmatprep.subr.mxu1 %v579_v59  ;;  %530 = vmatpush1.msra.mxu0 %v427_v60  ;;  %v475_v28 = vld [vmem:[#allocation5 + $0x190] sm:$0xff]  ;;  %v626_v29 = vld [vmem:[#allocation7 + $0x180] sm:$0xff]  ;;  %v474_v30 = vld [vmem:[#allocation5 + $0x188] sm:$0xff] }
  0x8a   : > { %685 = vmatpush1.msra.mxu1 %v578_v61  ;;  %531 = vmatprep.subr.mxu0 %v426_v62  ;;  %v625_v31 = vld [vmem:[#allocation7 + $0x178] sm:$0xff]  ;;  %v473_v32 = vld [vmem:[#allocation5 + $0x180] sm:$0xff]  ;;  %v624_v33 = vld [vmem:[#allocation7 + $0x170] sm:$0xff] }
  0x8b   : > { %686 = vmatprep.subr.mxu1 %v641_v63  ;;  %532 = vmatpush1.msra.mxu0 %v425_v0  ;;  %v472_v34 = vld [vmem:[#allocation5 + $0x178] sm:$0xff]  ;;  %v623_v35 = vld [vmem:[#allocation7 + $0x168] sm:$0xff]  ;;  %v471_v36 = vld [vmem:[#allocation5 + $0x170] sm:$0xff] }
  0x8c   : > { %687 = vmatpush2.msra.mxu1 %v640_v1  ;;  %533 = vmatprep.subr.mxu0 %v488_v2  ;;  %v622_v37 = vld [vmem:[#allocation7 + $0x160] sm:$0xff]  ;;  %v470_v38 = vld [vmem:[#allocation5 + $0x168] sm:$0xff]  ;;  %v621_v39 = vld [vmem:[#allocation7 + $0x158] sm:$0xff] }
  0x8d   : > { %688 = vmatprep.subr.mxu1 %v639_v3  ;;  %534 = vmatpush2.msra.mxu0 %v487_v4  ;;  %v469_v40 = vld [vmem:[#allocation5 + $0x160] sm:$0xff]  ;;  %v620_v41 = vld [vmem:[#allocation7 + $0x150] sm:$0xff]  ;;  %v468_v42 = vld [vmem:[#allocation5 + $0x158] sm:$0xff] }
  0x8e   : > { %689 = vmatpush2.msra.mxu1 %v638_v5  ;;  %535 = vmatprep.subr.mxu0 %v486_v6  ;;  %v619_v43 = vld [vmem:[#allocation7 + $0x148] sm:$0xff]  ;;  %v467_v44 = vld [vmem:[#allocation5 + $0x150] sm:$0xff]  ;;  %v618_v45 = vld [vmem:[#allocation7 + $0x140] sm:$0xff] }
  0x8f   : > { %690 = vmatprep.subr.mxu1 %v637_v7  ;;  %536 = vmatpush2.msra.mxu0 %v485_v8  ;;  %v466_v46 = vld [vmem:[#allocation5 + $0x148] sm:$0xff]  ;;  %v617_v47 = vld [vmem:[#allocation7 + $0x138] sm:$0xff]  ;;  %v465_v48 = vld [vmem:[#allocation5 + $0x140] sm:$0xff] }
  0x90   : > { %691 = vmatpush2.msra.mxu1 %v636_v9  ;;  %537 = vmatprep.subr.mxu0 %v484_v10  ;;  %v616_v49 = vld [vmem:[#allocation7 + $0x130] sm:$0xff]  ;;  %v464_v50 = vld [vmem:[#allocation5 + $0x138] sm:$0xff]  ;;  %v615_v51 = vld [vmem:[#allocation7 + $0x128] sm:$0xff] }
  0x91   : > { %692 = vmatprep.subr.mxu1 %v635_v11  ;;  %538 = vmatpush2.msra.mxu0 %v483_v12  ;;  %v463_v52 = vld [vmem:[#allocation5 + $0x130] sm:$0xff]  ;;  %v614_v53 = vld [vmem:[#allocation7 + $0x120] sm:$0xff]  ;;  %v462_v54 = vld [vmem:[#allocation5 + $0x128] sm:$0xff] }
  0x92   : > { %693 = vmatpush2.msra.mxu1 %v634_v13  ;;  %539 = vmatprep.subr.mxu0 %v482_v14  ;;  %v613_v55 = vld [vmem:[#allocation7 + $0x118] sm:$0xff]  ;;  %v421_v56 = vld [vmem:[%s3596_s26 + $0x8] sm:$0xff]  ;;  %v612_v57 = vld [vmem:[#allocation7 + $0x110] sm:$0xff] }
  0x93   : > { %694 = vmatprep.subr.mxu1 %v633_v15  ;;  %540 = vmatpush2.msra.mxu0 %v481_v16  ;;  %v461_v58 = vld [vmem:[#allocation5 + $0x120] sm:$0xff]  ;;  %v611_v59 = vld [vmem:[#allocation7 + $0x108] sm:$0xff]  ;;  %v460_v60 = vld [vmem:[#allocation5 + $0x118] sm:$0xff] }
  0x94   : > { %695 = vmatpush2.msra.mxu1 %v632_v17  ;;  %541 = vmatprep.subr.mxu0 %v480_v18  ;;  %v610_v61 = vld [vmem:[#allocation7 + $0x100] sm:$0xff]  ;;  %v459_v62 = vld [vmem:[#allocation5 + $0x110] sm:$0xff]  ;;  %v458_v0 = vld [vmem:[#allocation5 + $0x108] sm:$0xff] }
  0x95   : > { %696 = vmatprep.subr.mxu1 %v631_v19  ;;  %542 = vmatpush2.msra.mxu0 %v479_v20  ;;  %v3612_v63 = vld [vmem:[%s3596_s26] sm:$0xff]  ;;  %v3615_v1 = vld [vmem:[%s3596_s26 + $0x18] sm:$0xff]  ;;  %v3620_v3 = vld [vmem:[%s3596_s26 + $0x10] sm:$0xff]  ;;  %s3717_s26 = scalar_lea.vmem [#allocation11], %s2762_s24  ;;  %s3278_s24 = sshll.u32 %s3387_s19, 4  ;;  %s3279_s24 = int_to_ptr.vmem [resolvable:$false] %s3278_s24 }
  0x96   : > { %697 = vmatpush2.msra.mxu1 %v630_v21  ;;  %543 = vmatprep.subr.mxu0 %v478_v22  ;;  %v457_v2 = vld [vmem:[#allocation5 + $0x100] sm:$0xff]  ;;  %v762_v4 = vld [vmem:[#allocation8 + $0xf8] sm:$0xff]  ;;  %v761_v5 = vld [vmem:[#allocation8 + $0xf0] sm:$0xff]  ;;  %s2604_s18 = sshll.u32 %s3717_s26, 4  ;;  %s4007_s18 = int_to_ptr.vmem [resolvable:$true] %s2604_s18 }
  0x97   : > { %698 = vmatprep.subr.mxu1 %v629_v23  ;;  %544 = vmatpush2.msra.mxu0 %v477_v24  ;;  %v760_v6 = vld [vmem:[#allocation8 + $0xe8] sm:$0xff]  ;;  %v759_v7 = vld [vmem:[#allocation8 + $0xe0] sm:$0xff]  ;;  %v758_v8 = vld [vmem:[#allocation8 + $0xd8] sm:$0xff]  ;;  %s3274_s1 = scalar_lea.vmem %s4007_s18, 2048  ;;  %p3281_p0 = scmp.lt.s32.totalorder %s4007_s18, %s3279_s24 }
  0x98   : > { %699 = vmatpush2.msra.mxu1 %v628_v25  ;;  %545 = vmatprep.subr.mxu0 %v476_v26  ;;  %v757_v9 = vld [vmem:[#allocation8 + $0xd0] sm:$0xff]  ;;  %v756_v10 = vld [vmem:[#allocation8 + $0xc8] sm:$0xff]  ;;  %v755_v11 = vld [vmem:[#allocation8 + $0xc0] sm:$0xff]  ;;  %p3275_p1 = scmp.ne.s32.totalorder %s4007_s18, %s3274_s1 }
  0x99   : > { %700 = vmatprep.subr.mxu1 %v627_v27  ;;  %546 = vmatpush2.msra.mxu0 %v475_v28  ;;  %v754_v12 = vld [vmem:[#allocation8 + $0xb8] sm:$0xff]  ;;  %v753_v13 = vld [vmem:[#allocation8 + $0xb0] sm:$0xff]  ;;  %v752_v14 = vld [vmem:[#allocation8 + $0xa8] sm:$0xff] }
  0x9a   : > { %701 = vmatpush2.msra.mxu1 %v626_v29  ;;  %547 = vmatprep.subr.mxu0 %v474_v30  ;;  %v751_v15 = vld [vmem:[#allocation8 + $0xa0] sm:$0xff]  ;;  %v750_v16 = vld [vmem:[#allocation8 + $0x98] sm:$0xff]  ;;  %v749_v17 = vld [vmem:[#allocation8 + $0x90] sm:$0xff]  ;;  %v491_v29 = vlaneseq  ;;  %p3276_p9 = pnand %p3275_p1, %p4125_p12 }
  0x9b   : > { %702 = vmatprep.subr.mxu1 %v625_v31  ;;  %548 = vmatpush2.msra.mxu0 %v473_v32  ;;  %v748_v18 = vld [vmem:[#allocation8 + $0x88] sm:$0xff]  ;;  %v747_v19 = vld [vmem:[#allocation8 + $0x80] sm:$0xff]  ;;  %v746_v20 = vld [vmem:[#allocation8 + $0x78] sm:$0xff] }
  0x9c   : > { %703 = vmatpush2.msra.mxu1 %v624_v33  ;;  %549 = vmatprep.subr.mxu0 %v472_v34  ;;  %v745_v21 = vld [vmem:[#allocation8 + $0x70] sm:$0xff]  ;;  %v744_v22 = vld [vmem:[#allocation8 + $0x68] sm:$0xff]  ;;  %v743_v23 = vld [vmem:[#allocation8 + $0x60] sm:$0xff]  ;;  %v492_v31 = vshrl.u32 %v491_v29, 7  ;;  %p3277_p13 = pneg %p3276_p9 }
  0x9d   : > { %704 = vmatprep.subr.mxu1 %v623_v35  ;;  %550 = vmatpush2.msra.mxu0 %v471_v36  ;;  %v742_v24 = vld [vmem:[#allocation8 + $0x58] sm:$0xff]  ;;  %v741_v25 = vld [vmem:[#allocation8 + $0x50] sm:$0xff]  ;;  %v740_v26 = vld [vmem:[#allocation8 + $0x48] sm:$0xff] }
  0x9e   : > { %705 = vmatpush2.msra.mxu1 %v622_v37  ;;  %551 = vmatprep.subr.mxu0 %v470_v38  ;;  %v739_v27 = vld [vmem:[#allocation8 + $0x40] sm:$0xff]  ;;  %v738_v28 = vld [vmem:[#allocation8 + $0x38] sm:$0xff]  ;;  %v737_v30 = vld [vmem:[#allocation8 + $0x30] sm:$0xff]  ;;  %v3626_v38 = vsub.s32 0, %v492_v31 }
  0x9f   : > { %706 = vmatprep.subr.mxu1 %v621_v39  ;;  %552 = vmatpush2.msra.mxu0 %v469_v40  ;;  %v736_v32 = vld [vmem:[#allocation8 + $0x28] sm:$0xff]  ;;  %v735_v33 = vld [vmem:[#allocation8 + $0x20] sm:$0xff]  ;;  %v734_v34 = vld [vmem:[#allocation8 + $0x18] sm:$0xff] }
  0xa0   : > { %707 = vmatpush2.msra.mxu1 %v620_v41  ;;  %553 = vmatprep.subr.mxu0 %v468_v42  ;;  %v733_v35 = vld [vmem:[#allocation8 + $0x10] sm:$0xff]  ;;  %v732_v36 = vld [vmem:[#allocation8 + $0x8] sm:$0xff]  ;;  %v731_v37 = vld [vmem:[#allocation8] sm:$0xff] }
  0xa1   : > { %708 = vmatprep.subr.mxu1 %v619_v43  ;;  %554 = vmatpush2.msra.mxu0 %v467_v44  ;;  %v794_v39 = vld [vmem:[#allocation8 + $0x1f8] sm:$0xff]  ;;  %v3631_v40 = vld [vmem:[%s4094_s5] sm:$0x3]  ;;  %v793_v41 = vld [vmem:[#allocation8 + $0x1f0] sm:$0xff] }
  0xa2   : > { %709 = vmatpush2.msra.mxu1 %v618_v45  ;;  %555 = vmatprep.subr.mxu0 %v466_v46  ;;  %v792_v42 = vld [vmem:[#allocation8 + $0x1e8] sm:$0xff]  ;;  %v791_v43 = vld [vmem:[#allocation8 + $0x1e0] sm:$0xff]  ;;  %v647_v44 = vrot.slane %v3631_v40, %v3626_v38  ;;  %v790_v46 = vld [vmem:[#allocation8 + $0x1d8] sm:$0xff] }
  0xa3   : > { %710 = vmatprep.subr.mxu1 %v617_v47  ;;  %556 = vmatpush2.msra.mxu0 %v465_v48  ;;  %v489_v45 = vld [vmem:[%s4093_s4] sm:$0x3]  ;;  %v789_v47 = vld [vmem:[#allocation8 + $0x1d0] sm:$0xff]  ;;  %v788_v48 = vld [vmem:[#allocation8 + $0x1c8] sm:$0xff] }
  0xa4   : > { %711 = vmatpush2.msra.mxu1 %v616_v49  ;;  %557 = vmatprep.subr.mxu0 %v464_v50  ;;  %v3638_v50 = vsub.s32 1, %v492_v31  ;;  %v3683_v31 = vld [vmem:[%s419_s21] ss:$0 sm:$0xff]  ;;  %s2575_s21 = scalar_lea.sflag [#allocation12], %s3590_s2 }
  0xa5   : > { %712 = vmatprep.subr.mxu1 %v615_v51  ;;  %558 = vmatpush2.msra.mxu0 %v463_v52  ;;  %v494_v51 = vrot.slane %v489_v45, %v3626_v38  ;;  %v787_v52 = vld [vmem:[#allocation8 + $0x1c0] sm:$0xff] }
  0xa6   : > { %713 = vmatpush2.msra.mxu1 %v614_v53  ;;  %559 = vmatprep.subr.mxu0 %v462_v54  ;;  %v786_v54 = vld [vmem:[#allocation8 + $0x1b8] sm:$0xff] }
  0xa7   : > { %714 = vmatprep.subr.mxu1 %v613_v55  ;;  %718 = vmatprep.mubr.f32.mxu1 %v421_v56 }
  0xa8   : > { %715 = vmatpush2.msra.mxu1 %v612_v57  ;;  %560 = vmatpush2.msra.mxu0 %v461_v58  ;;  %v785_v57 = vld [vmem:[#allocation8 + $0x1b0] sm:$0xff] }
  0xa9   : > { %716 = vmatprep.subr.mxu1 %v611_v59  ;;  %561 = vmatprep.subr.mxu0 %v460_v60  ;;  %v784_v59 = vld [vmem:[#allocation8 + $0x1a8] sm:$0xff] }
  0xaa   : > { %717 = vmatpush2.msra.mxu1 %v610_v61  ;;  %562 = vmatpush2.msra.mxu0 %v459_v62  ;;  %v783_v62 = vld [vmem:[#allocation8 + $0x1a0] sm:$0xff] }
  0xab   : > { %719 = vmatmul.mubr.f32.vlgmr.msra.gmra.mxu1 %v3612_v63  ;;  %563 = vmatprep.subr.mxu0 %v458_v0 }
  0xac   : > { %724 = vmatprep.mubr.f32.mxu1 %v3615_v1  ;;  %564 = vmatpush2.msra.mxu0 %v457_v2 }
  0xad   : > { %565 = vmatprep.mubr.f32.mxu0 %v421_v56  ;;  %807 = vmatprep.subr.mxu0 %v762_v4 }
  0xae   : > { %566 = vmatmul.mubr.f32.vlgmr.msra.gmra.mxu0 %v3612_v63 }
  0xaf   : > { %725 = vmatmul.mubr.f32.gmra.mxu1 %v3620_v3  ;;  %571 = vmatprep.mubr.f32.mxu0 %v3615_v1 }
  0xb0   : > { %808 = vmatpush1.msra.mxu0 %v761_v5 }
  0xb1   : > { %809 = vmatprep.subr.mxu0 %v760_v6 }
  0xb2   : > { %572 = vmatmul.mubr.f32.gmra.mxu0 %v3620_v3 }
  0xb3   : > { %871 = vmatprep.mubr.f32.mxu0 %v421_v56  ;;  %810 = vmatpush1.msra.mxu0 %v759_v7  ;;  %v3646_v56 = vrot.slane %v489_v45, %v3638_v50  ;;  %v782_v7 = vld [vmem:[#allocation8 + $0x198] sm:$0xff] }
  0xb4   : > { %811 = vmatprep.subr.mxu0 %v758_v8 }
  0xb5   : > { %812 = vmatpush1.msra.mxu0 %v757_v9  ;;  %v781_v9 = vld [vmem:[#allocation8 + $0x190] sm:$0xff] }
  0xb6   : > { %813 = vmatprep.subr.mxu0 %v756_v10  ;;  %v780_v10 = vld [vmem:[#allocation8 + $0x188] sm:$0xff] }
  0xb7   : > { %814 = vmatpush1.msra.mxu0 %v755_v11  ;;  %v779_v11 = vld [vmem:[#allocation8 + $0x180] sm:$0xff] }
  0xb8   : > { %815 = vmatprep.subr.mxu0 %v754_v12 }
  0xb9   : > { %816 = vmatpush1.msra.mxu0 %v753_v13  ;;  %v778_v13 = vld [vmem:[#allocation8 + $0x178] sm:$0xff] }
  0xba   : > { %817 = vmatprep.subr.mxu0 %v752_v14  ;;  %v777_v14 = vld [vmem:[#allocation8 + $0x170] sm:$0xff] }
  0xbb   : > { %818 = vmatpush1.msra.mxu0 %v751_v15  ;;  %v776_v15 = vld [vmem:[#allocation8 + $0x168] sm:$0xff] }
  0xbc   : > { %819 = vmatprep.subr.mxu0 %v750_v16  ;;  %v775_v16 = vld [vmem:[#allocation8 + $0x160] sm:$0xff] }
  0xbd   : > { %820 = vmatpush1.msra.mxu0 %v749_v17  ;;  %v774_v17 = vld [vmem:[#allocation8 + $0x158] sm:$0xff] }
  0xbe   : > { %821 = vmatprep.subr.mxu0 %v748_v18  ;;  %v773_v18 = vld [vmem:[#allocation8 + $0x150] sm:$0xff] }
  0xbf   : > { %822 = vmatpush1.msra.mxu0 %v747_v19  ;;  %v772_v19 = vld [vmem:[#allocation8 + $0x148] sm:$0xff] }
  0xc0   : > { %823 = vmatprep.subr.mxu0 %v746_v20  ;;  %v771_v20 = vld [vmem:[#allocation8 + $0x140] sm:$0xff] }
  0xc1   : > { %824 = vmatpush1.msra.mxu0 %v745_v21  ;;  %v770_v21 = vld [vmem:[#allocation8 + $0x138] sm:$0xff] }
  0xc2   : > { %825 = vmatprep.subr.mxu0 %v744_v22  ;;  %v769_v22 = vld [vmem:[#allocation8 + $0x130] sm:$0xff] }
  0xc3   : > { %826 = vmatpush1.msra.mxu0 %v743_v23  ;;  %v768_v23 = vld [vmem:[#allocation8 + $0x128] sm:$0xff] }
  0xc4   : > { %827 = vmatprep.subr.mxu0 %v742_v24  ;;  %v767_v24 = vld [vmem:[#allocation8 + $0x120] sm:$0xff] }
  0xc5   : > { %828 = vmatpush1.msra.mxu0 %v741_v25  ;;  %v766_v25 = vld [vmem:[#allocation8 + $0x118] sm:$0xff] }
  0xc6   : > { %829 = vmatprep.subr.mxu0 %v740_v26  ;;  %v765_v26 = vld [vmem:[#allocation8 + $0x110] sm:$0xff] }
  0xc7   : > { %830 = vmatpush1.msra.mxu0 %v739_v27  ;;  %v764_v27 = vld [vmem:[#allocation8 + $0x108] sm:$0xff] }
  0xc8   : > { %831 = vmatprep.subr.mxu0 %v738_v28  ;;  %v763_v28 = vld [vmem:[#allocation8 + $0x100] sm:$0xff] }
  0xc9   : > { %832 = vmatpush1.msra.mxu0 %v737_v30 }
  0xca   : > { %833 = vmatprep.subr.mxu0 %v736_v32 }
  0xcb   : > { %834 = vmatpush1.msra.mxu0 %v735_v33 }
  0xcc   : > { %835 = vmatprep.subr.mxu0 %v734_v34 }
  0xcd   : > { %836 = vmatpush1.msra.mxu0 %v733_v35  ;;  %v795_v35 = vld [vmem:[%s4095_s6] sm:$0x3] }
  0xce   : > { %837 = vmatprep.subr.mxu0 %v732_v36  ;;  %v3695_v36 = vrot.slane %v795_v35, %v3638_v50 }
  0xcf   : > { %838 = vmatpush1.msra.mxu0 %v731_v37 }
  0xd0   : > { %839 = vmatprep.subr.mxu0 %v794_v39  ;;  %v800_v39 = vrot.slane %v795_v35, %v3626_v38 }
  0xd1   : > { %840 = vmatpush2.msra.mxu0 %v793_v41 }
  0xd2   : > { %841 = vmatprep.subr.mxu0 %v792_v42 }
  0xd3   : > { %842 = vmatpush2.msra.mxu0 %v791_v43 }
  0xd4   : > { %843 = vmatprep.subr.mxu0 %v790_v46 }
  0xd5   : > { %844 = vmatpush2.msra.mxu0 %v789_v47 }
  0xd6   : > { %845 = vmatprep.subr.mxu0 %v788_v48 }
  0xd7   : > { %846 = vmatpush2.msra.mxu0 %v787_v52 }
  0xd8   : > { %847 = vmatprep.subr.mxu0 %v786_v54 }
  0xd9   : > { %848 = vmatpush2.msra.mxu0 %v785_v57 }
  0xda   : > { %849 = vmatprep.subr.mxu0 %v784_v59 }
  0xdb   : > { %850 = vmatpush2.msra.mxu0 %v783_v62 }
  0xdc   : > { %851 = vmatprep.subr.mxu0 %v782_v7 }
  0xdd   : > { %852 = vmatpush2.msra.mxu0 %v781_v9 }
  0xde   : > { %853 = vmatprep.subr.mxu0 %v780_v10 }
  0xdf   : > { %854 = vmatpush2.msra.mxu0 %v779_v11 }
  0xe0   : > { %855 = vmatprep.subr.mxu0 %v778_v13 }
  0xe1   : > { %856 = vmatpush2.msra.mxu0 %v777_v14 }
  0xe2   : > { %857 = vmatprep.subr.mxu0 %v776_v15 }
  0xe3   : > { %858 = vmatpush2.msra.mxu0 %v775_v16 }
  0xe4   : > { %859 = vmatprep.subr.mxu0 %v774_v17 }
  0xe5   : > { %860 = vmatpush2.msra.mxu0 %v773_v18 }
  0xe6   : > { %861 = vmatprep.subr.mxu0 %v772_v19 }
  0xe7   : > { %862 = vmatpush2.msra.mxu0 %v771_v20 }
  0xe8   : > { %863 = vmatprep.subr.mxu0 %v770_v21 }
  0xe9   : > { %864 = vmatpush2.msra.mxu0 %v769_v22 }
  0xea   : > { %865 = vmatprep.subr.mxu0 %v768_v23 }
  0xeb   : > { %866 = vmatpush2.msra.mxu0 %v767_v24 }
  0xec   : > { %867 = vmatprep.subr.mxu0 %v766_v25 }
  0xed   : > { %868 = vmatpush2.msra.mxu0 %v765_v26 }
  0xee   : > { %869 = vmatprep.subr.mxu0 %v764_v27 }
  0xef   : > { %870 = vmatpush2.msra.mxu0 %v763_v28 }
  0xf0   : > { %872 = vmatmul.mubr.f32.vlgmr.msra.gmra.mxu0 %v3612_v63 }
  0xf1   : > { %877 = vmatprep.mubr.f32.mxu0 %v3615_v1 }
  0xf4   : > { %878 = vmatmul.mubr.f32.gmra.mxu0 %v3620_v3 }
 0x16b   : > { %v720_v49 = vpop.f32.mrf.mxu1 }
 0x16c   : > { %v3641_v53 = vadd.f32 %v720_v49, %v647_v44 }
 0x16d   : > { %v3643_v55 = vpop.f32.mrf.mxu1 }
 0x16e   : > { %1092 = vrot.lane.b32.xlu1 %v3641_v53, %s3384_s28  ;;  %v567_v58 = vpop.f32.mrf.mxu0 }
 0x16f   : > { %v726_v60 = vpop.f32.mrf.mxu1  ;;  %v568_v61 = vadd.f32 %v567_v58, %v494_v51 }
 0x170   : > { %v3650_v0 = vadd.f32 %v726_v60, %v647_v44  ;;  %v569_v2 = vpop.f32.mrf.mxu0 }
 0x171   : > { %v3652_v4 = vmul.f32 0.17677669, %v568_v61  ;;  %v3655_v5 = vadd.f32 %v569_v2, %v3646_v56  ;;  %v3678_v29 = vpop.f32.mrf.mxu1 }
 0x172   : > { %2901 = vmatprep.subr.msk.mxu1 %vm894_vm0, %v3650_v0  ;;  %v573_v6 = vpop.f32.mrf.mxu0 }
 0x173   : > { %2902 = vmatpush3.xpose.msk.msra.mxu1 %vm894_vm0, %v3650_v0  ;;  %v574_v8 = vadd.f32 %v573_v6, %v494_v51  ;;  %1088 = vrot.lane.b32.xlu1 %v3652_v4, %s3384_s28 }
 0x174   : > { %2903 = vmatprep.subr.msk.mxu1 %vm894_vm0, %v3641_v53  ;;  %2905 = vmatprep.mubr.msk.f32.mxu1 %vm894_vm0, %v3652_v4  ;;  %v3689_v34 = vpop.f32.mrf.mxu0 }
 0x175   : > { %v3667_v12 = vmul.f32 0.17677669, %v574_v8 }
 0x177   : > { %2904 = vmatpush3.xpose.msk.msra.mxu1 %vm894_vm0, %v3641_v53 }
 0x17a   : > { %2906 = vmatmul.mubr.msk.f32.vlgmr.msra.gmra.mxu1 %vm894_vm0, %v3667_v12 }
 0x1b0   : > { %v873_v37 = vpop.f32.mrf.mxu0 }
 0x1b1   : > { %v3701_v44 = vadd.f32 %v873_v37, %v800_v39 }
 0x1b2   : > { %v875_v41 = vpop.f32.mrf.mxu0 }
 0x1b3   : > { %v3699_v42 = vadd.f32 %v875_v41, %v3695_v36 }
 0x1b4   : > { %v879_v43 = vpop.f32.mrf.mxu0 }
 0x1b5   : > { %v3703_v45 = vadd.f32 %v879_v43, %v800_v39 }
 0x1b7   : > { %2908 = vmatprep.subr.mxu1 %v3703_v45 }
 0x1b8   : > { %2909 = vmatpush3.msra.mxu1 %v3703_v45 }
 0x1b9   : > { %2910 = vmatprep.subr.mxu1 %v3701_v44 }
 0x1ba   : > { %2911 = vmatpush3.msra.mxu1 %v3701_v44 }
 0x1e0   : > { %v1093_v60 = vpop.permute.xlu1 %1092 }
 0x1e5   : > { %v1089_v61 = vpop.permute.xlu1 %1088 }
 0x23a   : > { %v2907_v30 = vpop.f32.mrf.mxu1 }
 0x23b   : > { %v979_v63 = vadd.f32 %v2907_v30, %v3683_v31 }
 0x23c   : > { %v973_v32 = vpop.f32.mrf.mxu1 }
 0x23d   : > { %v974_v33 = vadd.f32 %v3683_v31, %v973_v32  ;;  %v986_v3 = vsel %vm982_vm1, %v979_v63, -inf }
 0x23f   : > { %v983_v1 = vsel %vm982_vm1, %v974_v33, -inf }
 0x240   : > { %984 = vmax.xlane.f32.xlu0 %v983_v1 }
 0x244   : > { %987 = vmax.xlane.f32.xlu0 %v986_v3 }
 0x25a   : > { %1094 = vrot.lane.b32.xlu0 %v3650_v0, %s3384_s28 }
 0x2c9   : > { %v985_v38 = vpop.xlane.xlu0 %984 }
 0x2ca   : > { %v989_v46 = vsub.f32 %v974_v33, %v985_v38 }
 0x2cc   : > { %v991_v49 = vmul.f32 1.442695, %v989_v46 }
 0x2cd   : > { %v988_v47 = vpop.xlane.xlu0 %987 }
 0x2ce   : > { %v990_v48 = vsub.f32 %v979_v63, %v988_v47 }
 0x2d0   : > { %v993_v51 = vmul.f32 1.442695, %v990_v48 }
 0x2d1   : > { %v1095_v52 = vpop.permute.xlu0 %1094 }
 0x2d2   : > { %3104 = vpow2.f32 %v993_v51  ;;  %2915 = vmatprep.subr.msk.mxu1 %vm894_vm0, %v1095_v52 }
 0x2d3   : > { %3106 = vpow2.f32 %v991_v49 }
 0x2df   : > { %v3105_v54 = vpop.eup %3104 }
 0x2e0   : > { %v998_v57 = vsel %vm982_vm1, %v3105_v54, 0.0  ;;  %v3107_v58 = vpop.eup %3106 }
 0x2e1   : > { %999 = vadd.xlane.f32.xlu1 %v998_v57  ;;  %v995_v59 = vsel %vm982_vm1, %v3107_v58, 0.0 }
 0x2e5   : > { %996 = vadd.xlane.f32.xlu1 %v995_v59 }
 0x2f6   : > { %1090 = vrot.lane.b32.xlu1 %v3667_v12, %s3384_s28 }
 0x36a   : > { %v1000_v62 = vpop.xlane.xlu1 %999 }
 0x36b   : > { %3108 = vrcp.f32 %v1000_v62 }
 0x36e   : > { %v997_v2 = vpop.xlane.xlu1 %996 }
 0x36f   : > { %3110 = vrcp.f32 %v997_v2 }
 0x372   : > { %v1091_v10 = vpop.permute.xlu1 %1090 }
 0x378   : > { %v3109_v6 = vpop.eup %3108 }
 0x379   : > { %v1004_v7 = vmul.f32 %v3109_v6, %v3105_v54 }
 0x37b   : > { %1006 = vst.msk [vmem:[%s3717_s26 + $0x8] sm:$0xff] %vm982_vm1, %v1004_v7 }
 0x37c   : > { %v3111_v8 = vpop.eup %3110 }
 0x37d   : > { %v1003_v9 = vmul.f32 %v3111_v8, %v3107_v58 }
 0x37f   : > { %1005 = vst.msk [vmem:[%s3717_s26] sm:$0xff] %vm982_vm1, %v1003_v9  ;;  %2912 = vmatprep.mubr.msk.f32.mxu1 %vm982_vm1, %v1003_v9 }
 0x380   : > { %2913 = vmatmul.mubr.msk.f32.vlgmr.msra.gmra.mxu1 %vm982_vm1, %v1004_v7 }
 0x381   : > { %2916 = vmatpush3.xpose.msk.msra.mxu1 %vm894_vm0, %v1095_v52  ;;  %2919 = vmatprep.mubr.msk.f32.mxu1 %vm894_vm0, %v1089_v61 }
 0x382   : > { %2917 = vmatprep.subr.msk.mxu1 %vm894_vm0, %v1093_v60 }
 0x385   : > { %2918 = vmatpush3.xpose.msk.msra.mxu1 %vm894_vm0, %v1093_v60 }
 0x388   : > { %2920 = vmatmul.mubr.msk.f32.vlgmr.msra.gmra.mxu1 %vm894_vm0, %v1091_v10 }
 0x440   : > { %v3730_v11 = vpop.f32.mrf.mxu1 }
 0x442   : > { %v3732_v13 = vpop.f32.mrf.mxu1 }
 0x448   : > { %v2921_v14 = vpop.f32.mrf.mxu1 }
 0x449   : > { %v1176_v15 = vadd.f32 %v2921_v14, %v3683_v31 }
 0x44a   : > { %v1170_v16 = vpop.f32.mrf.mxu1 }
 0x44b   : > { %v1171_v17 = vadd.f32 %v3683_v31, %v1170_v16  ;;  %v1182_v18 = vsel %vm982_vm1, %v1176_v15, -inf }
 0x44c   : > { %1183 = vmax.xlane.f32.xlu1 %v1182_v18 }
 0x44d   : > { %v1179_v19 = vsel %vm982_vm1, %v1171_v17, -inf }
 0x44e   : > { %1180 = vmax.xlane.f32.xlu0 %v1179_v19 }
 0x45d   : > { %1206 = vrot.lane.b32.xlu1 %v3701_v44, %s3384_s28 }
 0x461   : > { %1299 = vrot.lane.b32.xlu1 %v3650_v0, %s3385_s15 }
 0x465   : > { %1297 = vrot.lane.b32.xlu1 %v3641_v53, %s3385_s15 }
 0x469   : > { %1295 = vrot.lane.b32.xlu1 %v3667_v12, %s3385_s15 }
 0x4d5   : > { %v1184_v20 = vpop.xlane.xlu1 %1183 }
 0x4d6   : > { %v1186_v21 = vsub.f32 %v1176_v15, %v1184_v20 }
 0x4d7   : > { %v1181_v22 = vpop.xlane.xlu0 %1180 }
 0x4d8   : > { %v1189_v23 = vmul.f32 1.442695, %v1186_v21  ;;  %v1185_v24 = vsub.f32 %v1171_v17, %v1181_v22 }
 0x4d9   : > { %v1207_v63 = vpop.permute.xlu1 %1206 }
 0x4da   : > { %3112 = vpow2.f32 %v1189_v23  ;;  %v1187_v25 = vmul.f32 1.442695, %v1185_v24 }
 0x4dc   : > { %3114 = vpow2.f32 %v1187_v25 }
 0x4dd   : > { %v1300_v3 = vpop.permute.xlu1 %1299 }
 0x4e1   : > { %v1298_v38 = vpop.permute.xlu1 %1297 }
 0x4e5   : > { %v1296_v46 = vpop.permute.xlu1 %1295 }
 0x4e7   : > { %v3113_v26 = vpop.eup %3112 }
 0x4e8   : > { %v1194_v27 = vsel %vm982_vm1, %v3113_v26, 0.0 }
 0x4e9   : > { %v3115_v28 = vpop.eup %3114  ;;  %1195 = vadd.xlane.f32.xlu0 %v1194_v27 }
 0x4ea   : > { %v1191_v30 = vsel %vm982_vm1, %v3115_v28, 0.0 }
 0x4ed   : > { %1192 = vadd.xlane.f32.xlu0 %v1191_v30 }
 0x503   : > { %1208 = vrot.lane.b32.xlu0 %v3703_v45, %s3384_s28 }
 0x507   : > { %1293 = vrot.lane.b32.xlu0 %v3652_v4, %s3385_s15 }
 0x572   : > { %v1196_v32 = vpop.xlane.xlu0 %1195 }
 0x573   : > { %3116 = vrcp.f32 %v1196_v32 }
 0x576   : > { %v1193_v33 = vpop.xlane.xlu0 %1192 }
 0x577   : > { %3118 = vrcp.f32 %v1193_v33 }
 0x57a   : > { %v1209_v1 = vpop.permute.xlu0 %1208 }
 0x57b   : > { %2922 = vmatprep.subr.mxu1 %v1209_v1 }
 0x57c   : > { %2923 = vmatpush3.msra.mxu1 %v1209_v1 }
 0x57d   : > { %2924 = vmatprep.subr.mxu1 %v1207_v63 }
 0x57e   : > { %2925 = vmatpush3.msra.mxu1 %v1207_v63  ;;  %v1294_v43 = vpop.permute.xlu0 %1293 }
 0x57f   : > { %2929 = vmatprep.subr.msk.mxu1 %vm894_vm0, %v1300_v3 }
 0x580   : > { %v3117_v35 = vpop.eup %3116 }
 0x581   : > { %v1200_v37 = vmul.f32 %v3117_v35, %v3113_v26 }
 0x583   : > { %2775 = vst.msk [vmem:[%s3717_s26 + $0x18] sm:$0xff] %vm982_vm1, %v1200_v37 }
 0x584   : > { %v3119_v39 = vpop.eup %3118 }
 0x585   : > { %v1199_v41 = vmul.f32 %v3119_v39, %v3115_v28 }
 0x587   : > { %2774 = vst.msk [vmem:[%s3717_s26 + $0x10] sm:$0xff] %vm982_vm1, %v1199_v41  ;;  %2926 = vmatprep.mubr.msk.f32.mxu1 %vm982_vm1, %v1199_v41 }
 0x588   : > { %2927 = vmatmul.mubr.msk.f32.vlgmr.msra.gmra.mxu1 %vm982_vm1, %v1200_v37 }
 0x589   : > { %2930 = vmatpush3.xpose.msk.msra.mxu1 %vm894_vm0, %v1300_v3  ;;  %2933 = vmatprep.mubr.msk.f32.mxu1 %vm894_vm0, %v1294_v43 }
 0x58a   : > { %2931 = vmatprep.subr.msk.mxu1 %vm894_vm0, %v1298_v38 }
 0x58d   : > { %2932 = vmatpush3.xpose.msk.msra.mxu1 %vm894_vm0, %v1298_v38 }
 0x590   : > { %2934 = vmatmul.mubr.msk.f32.vlgmr.msra.gmra.mxu1 %vm894_vm0, %v1296_v46 }
 0x648   : > { %v3764_v47 = vpop.f32.mrf.mxu1 }
 0x64a   : > { %v3766_v48 = vpop.f32.mrf.mxu1 }
 0x650   : > { %v2935_v49 = vpop.f32.mrf.mxu1 }
 0x651   : > { %v1381_v51 = vadd.f32 %v2935_v49, %v3683_v31  ;;  %v651_v49 = vrot.slane %v3631_v40, %v3638_v50  ;;  %v881_v50 = vpop.f32.mrf.mxu0 }
 0x652   : > { %v1375_v52 = vpop.f32.mrf.mxu1 }
 0x653   : > { %v1376_v54 = vadd.f32 %v3683_v31, %v1375_v52  ;;  %v1387_v57 = vsel %vm982_vm1, %v1381_v51, -inf  ;;  %v3815_v52 = vadd.f32 %v3678_v29, %v651_v49  ;;  %v3828_v40 = vadd.f32 %v3643_v55, %v651_v49 }
 0x654   : > { %1388 = vmax.xlane.f32.xlu1 %v1387_v57  ;;  %v3840_v29 = vadd.f32 %v881_v50, %v3695_v36 }
 0x655   : > { %v1384_v58 = vsel %vm982_vm1, %v1376_v54, -inf }
 0x656   : > { %1385 = vmax.xlane.f32.xlu0 %v1384_v58 }
 0x665   : > { %1409 = vrot.lane.b32.xlu1 %v3701_v44, %s3385_s15 }
 0x669   : > { %1502 = vrot.lane.b32.xlu1 %v3650_v0, %s3386_s17 }
 0x66d   : > { %1500 = vrot.lane.b32.xlu1 %v3641_v53, %s3386_s17 }
 0x671   : > { %1498 = vrot.lane.b32.xlu1 %v3667_v12, %s3386_s17 }
 0x6dd   : > { %v1389_v59 = vpop.xlane.xlu1 %1388 }
 0x6de   : > { %v1391_v60 = vsub.f32 %v1381_v51, %v1389_v59  ;;  %v3822_v59 = vmul.f32 0.17677669, %v3655_v5  ;;  %v576_v5 = vadd.f32 %v3689_v34, %v3646_v56 }
 0x6df   : > { %v1386_v61 = vpop.xlane.xlu0 %1385 }
 0x6e0   : > { %v1394_v62 = vmul.f32 1.442695, %v1391_v60  ;;  %v1390_v2 = vsub.f32 %v1376_v54, %v1386_v61  ;;  %v3844_v55 = vmul.f32 0.17677669, %v576_v5 }
 0x6e1   : > { %v1410_v10 = vpop.permute.xlu1 %1409 }
 0x6e2   : > { %3120 = vpow2.f32 %v1394_v62  ;;  %v1392_v6 = vmul.f32 1.442695, %v1390_v2 }
 0x6e4   : > { %3122 = vpow2.f32 %v1392_v6 }
 0x6e5   : > { %v1503_v15 = vpop.permute.xlu1 %1502 }
 0x6e9   : > { %v1501_v20 = vpop.permute.xlu1 %1500 }
 0x6ed   : > { %v1499_v21 = vpop.permute.xlu1 %1498 }
 0x6ef   : > { %v3121_v7 = vpop.eup %3120 }
 0x6f0   : > { %v1399_v8 = vsel %vm982_vm1, %v3121_v7, 0.0 }
 0x6f1   : > { %v3123_v9 = vpop.eup %3122  ;;  %1400 = vadd.xlane.f32.xlu0 %v1399_v8 }
 0x6f2   : > { %v1396_v0 = vsel %vm982_vm1, %v3123_v9, 0.0 }
 0x6f5   : > { %1397 = vadd.xlane.f32.xlu0 %v1396_v0 }
 0x70b   : > { %1411 = vrot.lane.b32.xlu0 %v3703_v45, %s3385_s15 }
 0x70f   : > { %1496 = vrot.lane.b32.xlu0 %v3652_v4, %s3386_s17 }
 0x77a   : > { %v1401_v53 = vpop.xlane.xlu0 %1400 }
 0x77b   : > { %3124 = vrcp.f32 %v1401_v53 }
 0x77e   : > { %v1398_v12 = vpop.xlane.xlu0 %1397 }
 0x77f   : > { %3126 = vrcp.f32 %v1398_v12 }
 0x782   : > { %v1412_v14 = vpop.permute.xlu0 %1411 }
 0x783   : > { %2936 = vmatprep.subr.mxu1 %v1412_v14 }
 0x784   : > { %2937 = vmatpush3.msra.mxu1 %v1412_v14 }
 0x785   : > { %2938 = vmatprep.subr.mxu1 %v1410_v10 }
 0x786   : > { %2939 = vmatpush3.msra.mxu1 %v1410_v10  ;;  %v1497_v19 = vpop.permute.xlu0 %1496 }
 0x787   : > { %2943 = vmatprep.subr.msk.mxu1 %vm894_vm0, %v1503_v15 }
 0x788   : > { %v3125_v16 = vpop.eup %3124 }
 0x789   : > { %v1405_v17 = vmul.f32 %v3125_v16, %v3121_v7 }
 0x78b   : > { %2783 = vst.msk [vmem:[%s3717_s26 + $0x28] sm:$0xff] %vm982_vm1, %v1405_v17 }
 0x78c   : > { %v3127_v18 = vpop.eup %3126 }
 0x78d   : > { %v1404_v4 = vmul.f32 %v3127_v18, %v3123_v9 }
 0x78f   : > { %2782 = vst.msk [vmem:[%s3717_s26 + $0x20] sm:$0xff] %vm982_vm1, %v1404_v4  ;;  %2940 = vmatprep.mubr.msk.f32.mxu1 %vm982_vm1, %v1404_v4 }
 0x790   : > { %2941 = vmatmul.mubr.msk.f32.vlgmr.msra.gmra.mxu1 %vm982_vm1, %v1405_v17 }
 0x791   : > { %2944 = vmatpush3.xpose.msk.msra.mxu1 %vm894_vm0, %v1503_v15  ;;  %2947 = vmatprep.mubr.msk.f32.mxu1 %vm894_vm0, %v1497_v19 }
 0x792   : > { %2945 = vmatprep.subr.msk.mxu1 %vm894_vm0, %v1501_v20 }
 0x795   : > { %2946 = vmatpush3.xpose.msk.msra.mxu1 %vm894_vm0, %v1501_v20 }
 0x798   : > { %2948 = vmatmul.mubr.msk.f32.vlgmr.msra.gmra.mxu1 %vm894_vm0, %v1499_v21 }
 0x850   : > { %v3798_v22 = vpop.f32.mrf.mxu1 }
 0x852   : > { %v3800_v23 = vpop.f32.mrf.mxu1 }
 0x858   : > { %v2949_v24 = vpop.f32.mrf.mxu1 }
 0x859   : > { %v1584_v25 = vadd.f32 %v2949_v24, %v3683_v31 }
 0x85a   : > { %v1578_v26 = vpop.f32.mrf.mxu1 }
 0x85b   : > { %v1579_v27 = vadd.f32 %v3683_v31, %v1578_v26  ;;  %v1590_v28 = vsel %vm982_vm1, %v1584_v25, -inf }
 0x85c   : > { %1591 = vmax.xlane.f32.xlu1 %v1590_v28 }
 0x85d   : > { %v1587_v30 = vsel %vm982_vm1, %v1579_v27, -inf }
 0x85e   : > { %1588 = vmax.xlane.f32.xlu0 %v1587_v30 }
 0x86d   : > { %1612 = vrot.lane.b32.xlu1 %v3701_v44, %s3386_s17 }
 0x8e5   : > { %v1592_v32 = vpop.xlane.xlu1 %1591 }
 0x8e6   : > { %v1594_v33 = vsub.f32 %v1584_v25, %v1592_v32 }
 0x8e7   : > { %v1589_v63 = vpop.xlane.xlu0 %1588 }
 0x8e8   : > { %v1597_v1 = vmul.f32 1.442695, %v1594_v33  ;;  %v1593_v3 = vsub.f32 %v1579_v27, %v1589_v63 }
 0x8e9   : > { %v1613_v51 = vpop.permute.xlu1 %1612 }
 0x8ea   : > { %3128 = vpow2.f32 %v1597_v1  ;;  %v1595_v35 = vmul.f32 1.442695, %v1593_v3 }
 0x8ec   : > { %3130 = vpow2.f32 %v1595_v35 }
 0x8f7   : > { %v3129_v37 = vpop.eup %3128 }
 0x8f8   : > { %v1602_v39 = vsel %vm982_vm1, %v3129_v37, 0.0 }
 0x8f9   : > { %v3131_v41 = vpop.eup %3130  ;;  %1603 = vadd.xlane.f32.xlu0 %v1602_v39 }
 0x8fa   : > { %v1599_v43 = vsel %vm982_vm1, %v3131_v41, 0.0 }
 0x8fd   : > { %1600 = vadd.xlane.f32.xlu0 %v1599_v43 }
 0x913   : > { %1614 = vrot.lane.b32.xlu0 %v3703_v45, %s3386_s17 }
 0x982   : > { %v1604_v44 = vpop.xlane.xlu0 %1603 }
 0x983   : > { %3132 = vrcp.f32 %v1604_v44 }
 0x986   : > { %v1601_v38 = vpop.xlane.xlu0 %1600 }
 0x987   : > { %3134 = vrcp.f32 %v1601_v38 }
 0x98a   : > { %v1615_v46 = vpop.permute.xlu0 %1614 }
 0x98b   : > { %2950 = vmatprep.subr.mxu1 %v1615_v46 }
 0x98c   : > { %2951 = vmatpush3.msra.mxu1 %v1615_v46 }
 0x98d   : > { %2952 = vmatprep.subr.mxu1 %v1613_v51 }
 0x98e   : > { %2953 = vmatpush3.msra.mxu1 %v1613_v51 }
 0x98f   : > { %2957 = vmatprep.subr.msk.mxu1 %vm894_vm0, %v3815_v52 }
 0x990   : > { %v3133_v45 = vpop.eup %3132 }
 0x991   : > { %v1608_v54 = vmul.f32 %v3133_v45, %v3129_v37 }
 0x993   : > { %2791 = vst.msk [vmem:[%s3717_s26 + $0x38] sm:$0xff] %vm982_vm1, %v1608_v54 }
 0x994   : > { %v3135_v57 = vpop.eup %3134 }
 0x995   : > { %v1607_v58 = vmul.f32 %v3135_v57, %v3131_v41 }
 0x997   : > { %2790 = vst.msk [vmem:[%s3717_s26 + $0x30] sm:$0xff] %vm982_vm1, %v1607_v58  ;;  %2954 = vmatprep.mubr.msk.f32.mxu1 %vm982_vm1, %v1607_v58 }
 0x998   : > { %2955 = vmatmul.mubr.msk.f32.vlgmr.msra.gmra.mxu1 %vm982_vm1, %v1608_v54 }
 0x999   : > { %2958 = vmatpush3.xpose.msk.msra.mxu1 %vm894_vm0, %v3815_v52  ;;  %2961 = vmatprep.mubr.msk.f32.mxu1 %vm894_vm0, %v3822_v59 }
 0x99a   : > { %2959 = vmatprep.subr.msk.mxu1 %vm894_vm0, %v3828_v40 }
 0x99d   : > { %2960 = vmatpush3.xpose.msk.msra.mxu1 %vm894_vm0, %v3828_v40 }
 0x99e   : > { %2964 = vmatprep.subr.mxu1 %v3840_v29 }
 0x9a0   : > { %2962 = vmatmul.mubr.msk.f32.vlgmr.msra.gmra.mxu1 %vm894_vm0, %v3844_v55 }
 0x9a1   : > { %2965 = vmatpush3.msra.mxu1 %v3840_v29 }
 0x9a2   : > { %2966 = vmatprep.subr.mxu1 %v3699_v42 }
 0x9a3   : > { %2967 = vmatpush3.msra.mxu1 %v3699_v42 }
 0xa58   : > { %v3852_v56 = vpop.f32.mrf.mxu1 }
 0xa5a   : > { %v3854_v34 = vpop.f32.mrf.mxu1 }
 0xa60   : > { %v2963_v36 = vpop.f32.mrf.mxu1 }
 0xa61   : > { %v1783_v60 = vadd.f32 %v2963_v36, %v3683_v31 }
 0xa62   : > { %v1777_v61 = vpop.f32.mrf.mxu1 }
 0xa63   : > { %v1778_v62 = vadd.f32 %v3683_v31, %v1777_v61  ;;  %v1789_v2 = vsel %vm982_vm1, %v1783_v60, -inf }
 0xa64   : > { %1790 = vmax.xlane.f32.xlu0 %v1789_v2 }
 0xa65   : > { %v1786_v6 = vsel %vm982_vm1, %v1778_v62, -inf }
 0xa66   : > { %1787 = vmax.xlane.f32.xlu1 %v1786_v6 }
 0xaed   : > { %v1791_v7 = vpop.xlane.xlu0 %1790 }
 0xaee   : > { %v1793_v8 = vsub.f32 %v1783_v60, %v1791_v7 }
 0xaef   : > { %v1788_v9 = vpop.xlane.xlu1 %1787 }
 0xaf0   : > { %v1796_v0 = vmul.f32 1.442695, %v1793_v8  ;;  %v1792_v53 = vsub.f32 %v1778_v62, %v1788_v9 }
 0xaf2   : > { %3136 = vpow2.f32 %v1796_v0  ;;  %v1794_v12 = vmul.f32 1.442695, %v1792_v53 }
 0xaf4   : > { %3138 = vpow2.f32 %v1794_v12 }
 0xaff   : > { %v3137_v10 = vpop.eup %3136 }
 0xb00   : > { %v1801_v14 = vsel %vm982_vm1, %v3137_v10, 0.0 }
 0xb01   : > { %v3139_v15 = vpop.eup %3138  ;;  %1802 = vadd.xlane.f32.xlu1 %v1801_v14 }
 0xb02   : > { %v1798_v16 = vsel %vm982_vm1, %v3139_v15, 0.0 }
 0xb03   : > { %1799 = vadd.xlane.f32.xlu0 %v1798_v16 }
 0xb12   : > { %1896 = vrot.lane.b32.xlu1 %v3828_v40, %s3384_s28 }
 0xb16   : > { %1892 = vrot.lane.b32.xlu1 %v3822_v59, %s3384_s28 }
 0xb19   : > { %1898 = vrot.lane.b32.xlu0 %v3815_v52, %s3384_s28 }
 0xb1a   : > { %2103 = vrot.lane.b32.xlu1 %v3815_v52, %s3385_s15 }
 0xb1d   : > { %1894 = vrot.lane.b32.xlu0 %v3844_v55, %s3384_s28 }
 0xb1e   : > { %2101 = vrot.lane.b32.xlu1 %v3828_v40, %s3385_s15 }
 0xb21   : > { %2097 = vrot.lane.b32.xlu0 %v3822_v59, %s3385_s15 }
 0xb22   : > { %2099 = vrot.lane.b32.xlu1 %v3844_v55, %s3385_s15 }
 0xb8a   : > { %v1803_v17 = vpop.xlane.xlu1 %1802 }
 0xb8b   : > { %3140 = vrcp.f32 %v1803_v17 }
 0xb8c   : > { %v1800_v18 = vpop.xlane.xlu0 %1799 }
 0xb8d   : > { %3142 = vrcp.f32 %v1800_v18 }
 0xb8e   : > { %v1897_v19 = vpop.permute.xlu1 %1896 }
 0xb90   : > { %v1899_v4 = vpop.permute.xlu0 %1898 }
 0xb91   : > { %2971 = vmatprep.subr.msk.mxu1 %vm894_vm0, %v1899_v4 }
 0xb92   : > { %v1893_v25 = vpop.permute.xlu1 %1892 }
 0xb94   : > { %v1895_v27 = vpop.permute.xlu0 %1894 }
 0xb96   : > { %v2104_v28 = vpop.permute.xlu1 %2103 }
 0xb98   : > { %v3141_v20 = vpop.eup %3140  ;;  %v2098_v30 = vpop.permute.xlu0 %2097 }
 0xb99   : > { %v1807_v21 = vmul.f32 %v3141_v20, %v3137_v10 }
 0xb9a   : > { %v3143_v24 = vpop.eup %3142  ;;  %v2102_v32 = vpop.permute.xlu1 %2101 }
 0xb9b   : > { %v1806_v26 = vmul.f32 %v3143_v24, %v3139_v15  ;;  %2799 = vst.msk [vmem:[%s3717_s26 + $0x48] sm:$0xff] %vm982_vm1, %v1807_v21 }
 0xb9d   : > { %2798 = vst.msk [vmem:[%s3717_s26 + $0x40] sm:$0xff] %vm982_vm1, %v1806_v26  ;;  %2968 = vmatprep.mubr.msk.f32.mxu1 %vm982_vm1, %v1806_v26 }
 0xb9e   : > { %2969 = vmatmul.mubr.msk.f32.vlgmr.msra.gmra.mxu1 %vm982_vm1, %v1807_v21  ;;  %v2100_v33 = vpop.permute.xlu1 %2099 }
 0xb9f   : > { %2972 = vmatpush3.xpose.msk.msra.mxu1 %vm894_vm0, %v1899_v4  ;;  %2975 = vmatprep.mubr.msk.f32.mxu1 %vm894_vm0, %v1893_v25 }
 0xba0   : > { %2973 = vmatprep.subr.msk.mxu1 %vm894_vm0, %v1897_v19 }
 0xba3   : > { %2974 = vmatpush3.xpose.msk.msra.mxu1 %vm894_vm0, %v1897_v19 }
 0xba4   : > { %2985 = vmatprep.subr.msk.mxu1 %vm894_vm0, %v2104_v28 }
 0xba6   : > { %2976 = vmatmul.mubr.msk.f32.vlgmr.msra.gmra.mxu1 %vm894_vm0, %v1895_v27 }
 0xba7   : > { %2986 = vmatpush3.xpose.msk.msra.mxu1 %vm894_vm0, %v2104_v28  ;;  %2989 = vmatprep.mubr.msk.f32.mxu1 %vm894_vm0, %v2098_v30 }
 0xba8   : > { %2987 = vmatprep.subr.msk.mxu1 %vm894_vm0, %v2102_v32 }
 0xbab   : > { %2988 = vmatpush3.xpose.msk.msra.mxu1 %vm894_vm0, %v2102_v32 }
 0xbae   : > { %2990 = vmatmul.mubr.msk.f32.vlgmr.msra.gmra.mxu1 %vm894_vm0, %v2100_v33 }
 0xc5e   : > { %v3896_v63 = vpop.f32.mrf.mxu1 }
 0xc60   : > { %v3898_v1 = vpop.f32.mrf.mxu1 }
 0xc66   : > { %v2977_v3 = vpop.f32.mrf.mxu1 }
 0xc67   : > { %v1980_v35 = vadd.f32 %v2977_v3, %v3683_v31 }
 0xc68   : > { %v1974_v37 = vpop.f32.mrf.mxu1 }
 0xc69   : > { %v1975_v39 = vadd.f32 %v3683_v31, %v1974_v37  ;;  %v1986_v41 = vsel %vm982_vm1, %v1980_v35, -inf }
 0xc6a   : > { %1987 = vmax.xlane.f32.xlu1 %v1986_v41 }
 0xc6b   : > { %v1983_v43 = vsel %vm982_vm1, %v1975_v39, -inf }
 0xc6c   : > { %1984 = vmax.xlane.f32.xlu0 %v1983_v43 }
 0xc6e   : > { %v2991_v44 = vpop.f32.mrf.mxu1 }
 0xc6f   : > { %v2185_v49 = vadd.f32 %v2991_v44, %v3683_v31 }
 0xc70   : > { %v2179_v38 = vpop.f32.mrf.mxu1 }
 0xc71   : > { %v2180_v46 = vadd.f32 %v3683_v31, %v2179_v38  ;;  %v2191_v45 = vsel %vm982_vm1, %v2185_v49, -inf }
 0xc73   : > { %v2188_v51 = vsel %vm982_vm1, %v2180_v46, -inf }
 0xc74   : > { %2189 = vmax.xlane.f32.xlu0 %v2188_v51 }
 0xc78   : > { %2192 = vmax.xlane.f32.xlu0 %v2191_v45 }
 0xc7b   : > { %2010 = vrot.lane.b32.xlu1 %v3699_v42, %s3384_s28 }
 0xc7f   : > { %2215 = vrot.lane.b32.xlu1 %v3840_v29, %s3385_s15 }
 0xc83   : > { %2213 = vrot.lane.b32.xlu1 %v3699_v42, %s3385_s15 }
 0xc8e   : > { %2012 = vrot.lane.b32.xlu0 %v3840_v29, %s3384_s28 }
 0xcf3   : > { %v1988_v54 = vpop.xlane.xlu1 %1987 }
 0xcf4   : > { %v1990_v57 = vsub.f32 %v1980_v35, %v1988_v54 }
 0xcf5   : > { %v1985_v58 = vpop.xlane.xlu0 %1984 }
 0xcf6   : > { %v1993_v50 = vmul.f32 1.442695, %v1990_v57  ;;  %v1989_v5 = vsub.f32 %v1975_v39, %v1985_v58 }
 0xcf7   : > { %v2011_v7 = vpop.permute.xlu1 %2010 }
 0xcf8   : > { %3144 = vpow2.f32 %v1993_v50  ;;  %v1991_v36 = vmul.f32 1.442695, %v1989_v5 }
 0xcfa   : > { %3146 = vpow2.f32 %v1991_v36 }
 0xcfb   : > { %v2216_v14 = vpop.permute.xlu1 %2215 }
 0xcfd   : > { %v2190_v60 = vpop.xlane.xlu0 %2189 }
 0xcfe   : > { %v2194_v61 = vsub.f32 %v2180_v46, %v2190_v60 }
 0xcff   : > { %v2214_v4 = vpop.permute.xlu1 %2213 }
 0xd00   : > { %v2196_v62 = vmul.f32 1.442695, %v2194_v61 }
 0xd01   : > { %v2193_v2 = vpop.xlane.xlu0 %2192 }
 0xd02   : > { %3148 = vpow2.f32 %v2196_v62  ;;  %v2195_v6 = vsub.f32 %v2185_v49, %v2193_v2 }
 0xd04   : > { %v2198_v8 = vmul.f32 1.442695, %v2195_v6 }
 0xd05   : > { %v3145_v9 = vpop.eup %3144  ;;  %v2013_v0 = vpop.permute.xlu0 %2012 }
 0xd06   : > { %3150 = vpow2.f32 %v2198_v8  ;;  %2978 = vmatprep.subr.mxu0 %v2013_v0  ;;  %v1998_v53 = vsel %vm982_vm1, %v3145_v9, 0.0 }
 0xd07   : > { %v3147_v12 = vpop.eup %3146  ;;  %2979 = vmatpush3.msra.mxu0 %v2013_v0  ;;  %1999 = vadd.xlane.f32.xlu1 %v1998_v53 }
 0xd08   : > { %2980 = vmatprep.subr.mxu0 %v2011_v7  ;;  %v1995_v10 = vsel %vm982_vm1, %v3147_v12, 0.0 }
 0xd09   : > { %1996 = vadd.xlane.f32.xlu0 %v1995_v10  ;;  %2981 = vmatpush3.msra.mxu0 %v2011_v7 }
 0xd0a   : > { %2992 = vmatprep.subr.mxu0 %v2216_v14 }
 0xd0f   : > { %v3149_v15 = vpop.eup %3148 }
 0xd10   : > { %v2200_v16 = vsel %vm982_vm1, %v3149_v15, 0.0 }
 0xd11   : > { %2201 = vadd.xlane.f32.xlu0 %v2200_v16 }
 0xd13   : > { %v3151_v17 = vpop.eup %3150 }
 0xd14   : > { %v2203_v18 = vsel %vm982_vm1, %v3151_v17, 0.0 }
 0xd15   : > { %2204 = vadd.xlane.f32.xlu1 %v2203_v18 }
 0xd26   : > { %2304 = vrot.lane.b32.xlu1 %v3828_v40, %s3386_s17 }
 0xd27   : > { %2306 = vrot.lane.b32.xlu0 %v3815_v52, %s3386_s17 }
 0xd2a   : > { %2302 = vrot.lane.b32.xlu1 %v3844_v55, %s3386_s17 }
 0xd2b   : > { %2300 = vrot.lane.b32.xlu0 %v3822_v59, %s3386_s17 }
 0xd90   : > { %v2000_v19 = vpop.xlane.xlu1 %1999 }
 0xd91   : > { %3152 = vrcp.f32 %v2000_v19 }
 0xd92   : > { %v1997_v20 = vpop.xlane.xlu0 %1996 }
 0xd93   : > { %3154 = vrcp.f32 %v1997_v20 }
 0xd9a   : > { %v2202_v21 = vpop.xlane.xlu0 %2201 }
 0xd9b   : > { %3156 = vrcp.f32 %v2202_v21 }
 0xd9e   : > { %v3153_v24 = vpop.eup %3152  ;;  %v2205_v40 = vpop.xlane.xlu1 %2204 }
 0xd9f   : > { %v2004_v25 = vmul.f32 %v3153_v24, %v3145_v9  ;;  %3158 = vrcp.f32 %v2205_v40  ;;  %v2307_v59 = vpop.permute.xlu0 %2306 }
 0xda0   : > { %v3155_v52 = vpop.eup %3154 }
 0xda1   : > { %2807 = vst.msk [vmem:[%s3717_s26 + $0x58] sm:$0xff] %vm982_vm1, %v2004_v25  ;;  %v2003_v55 = vmul.f32 %v3155_v52, %v3147_v12 }
 0xda2   : > { %v2305_v33 = vpop.permute.xlu1 %2304 }
 0xda3   : > { %2806 = vst.msk [vmem:[%s3717_s26 + $0x50] sm:$0xff] %vm982_vm1, %v2003_v55  ;;  %2982 = vmatprep.mubr.msk.f32.mxu0 %vm982_vm1, %v2003_v55  ;;  %v2301_v32 = vpop.permute.xlu0 %2300 }
 0xda4   : > { %2983 = vmatmul.mubr.msk.f32.vlgmr.msra.gmra.mxu0 %vm982_vm1, %v2004_v25 }
 0xda5   : > { %2993 = vmatpush3.msra.mxu0 %v2216_v14 }
 0xda6   : > { %2994 = vmatprep.subr.mxu0 %v2214_v4  ;;  %v2303_v3 = vpop.permute.xlu1 %2302 }
 0xda7   : > { %2995 = vmatpush3.msra.mxu0 %v2214_v4 }
 0xda8   : > { %v3157_v26 = vpop.eup %3156  ;;  %2999 = vmatprep.subr.msk.mxu0 %vm894_vm0, %v2307_v59 }
 0xda9   : > { %v2208_v27 = vmul.f32 %v3157_v26, %v3149_v15 }
 0xdab   : > { %2814 = vst.msk [vmem:[%s3717_s26 + $0x60] sm:$0xff] %vm982_vm1, %v2208_v27  ;;  %2996 = vmatprep.mubr.msk.f32.mxu0 %vm982_vm1, %v2208_v27 }
 0xdac   : > { %v3159_v28 = vpop.eup %3158 }
 0xdad   : > { %v2209_v30 = vmul.f32 %v3159_v28, %v3151_v17 }
 0xdaf   : > { %2815 = vst.msk [vmem:[%s3717_s26 + $0x68] sm:$0xff] %vm982_vm1, %v2209_v30  ;;  %2997 = vmatmul.mubr.msk.f32.vlgmr.msra.gmra.mxu0 %vm982_vm1, %v2209_v30 }
 0xdb0   : > { %3000 = vmatpush3.xpose.msk.msra.mxu0 %vm894_vm0, %v2307_v59  ;;  %3003 = vmatprep.mubr.msk.f32.mxu0 %vm894_vm0, %v2301_v32 }
 0xdb1   : > { %3001 = vmatprep.subr.msk.mxu0 %vm894_vm0, %v2305_v33 }
 0xdb4   : > { %3002 = vmatpush3.xpose.msk.msra.mxu0 %vm894_vm0, %v2305_v33 }
 0xdb7   : > { %3004 = vmatmul.mubr.msk.f32.vlgmr.msra.gmra.mxu0 %vm894_vm0, %v2303_v3 }
 0xe64   : > { %v2984_v35 = vpop.f32.mrf.mxu0 }
 0xe66   : > { %v2088_v37 = vpop.f32.mrf.mxu0 }
 0xe6f   : > { %v2998_v39 = vpop.f32.mrf.mxu0 }
 0xe71   : > { %v2291_v41 = vpop.f32.mrf.mxu0 }
 0xe77   : > { %v3005_v43 = vpop.f32.mrf.mxu0 }
 0xe78   : > { %v2388_v44 = vadd.f32 %v3005_v43, %v3683_v31 }
 0xe79   : > { %v2382_v38 = vpop.f32.mrf.mxu0 }
 0xe7a   : > { %v2383_v46 = vadd.f32 %v3683_v31, %v2382_v38  ;;  %v2394_v49 = vsel %vm982_vm1, %v2388_v44, -inf }
 0xe7b   : > { %2395 = vmax.xlane.f32.xlu1 %v2394_v49 }
 0xe7c   : > { %v2391_v51 = vsel %vm982_vm1, %v2383_v46, -inf }
 0xe7d   : > { %2392 = vmax.xlane.f32.xlu0 %v2391_v51 }
 0xe8c   : > { %2416 = vrot.lane.b32.xlu1 %v3699_v42, %s3386_s17 }
 0xe90   : > { %2505 = vrot.lane.b32.xlu1 %v3766_v48, %s3386_s17 }
 0xe94   : > { %2507 = vrot.lane.b32.xlu1 %v3764_v47, %s3386_s17 }
 0xe98   : > { %2531 = vrot.lane.b32.xlu1 %v2984_v35, %s3386_s17 }
 0xe9c   : > { %2515 = vrot.lane.b32.xlu1 %v3798_v22, %s3385_s15 }
 0xea0   : > { %2539 = vrot.lane.b32.xlu1 %v2998_v39, %s3385_s15 }
 0xea4   : > { %2523 = vrot.lane.b32.xlu1 %v3852_v56, %s3384_s28 }
 0xf04   : > { %v2396_v31 = vpop.xlane.xlu1 %2395 }
 0xf05   : > { %v2398_v45 = vsub.f32 %v2388_v44, %v2396_v31 }
 0xf06   : > { %v2393_v54 = vpop.xlane.xlu0 %2392 }
 0xf07   : > { %v2401_v42 = vmul.f32 1.442695, %v2398_v45  ;;  %v2397_v57 = vsub.f32 %v2383_v46, %v2393_v54 }
 0xf08   : > { %v2417_v58 = vpop.permute.xlu1 %2416 }
 0xf09   : > { %3160 = vpow2.f32 %v2401_v42  ;;  %v2399_v48 = vmul.f32 1.442695, %v2397_v57 }
 0xf0b   : > { %3162 = vpow2.f32 %v2399_v48 }
 0xf0c   : > { %v2506_v47 = vpop.permute.xlu1 %2505 }
 0xf0d   : > { %v2551_v18 = vsel %vm894_vm0, %v3732_v13, %v2506_v47 }
 0xf10   : > { %v2508_v50 = vpop.permute.xlu1 %2507 }
 0xf11   : > { %v2552_v7 = vsel %vm894_vm0, %v3730_v11, %v2508_v50 }
 0xf14   : > { %v2532_v5 = vpop.permute.xlu1 %2531 }
 0xf15   : > { %v2560_v62 = vsel %vm894_vm0, %v3896_v63, %v2532_v5 }
 0xf16   : > { %v3161_v36 = vpop.eup %3160 }
 0xf17   : > { %v2406_v22 = vsel %vm982_vm1, %v3161_v36, 0.0 }
 0xf18   : > { %v3163_v60 = vpop.eup %3162  ;;  %v2516_v61 = vpop.permute.xlu1 %2515  ;;  %2407 = vadd.xlane.f32.xlu0 %v2406_v22 }
 0xf19   : > { %v2403_v56 = vsel %vm982_vm1, %v3163_v60, 0.0  ;;  %v2555_v8 = vsel %vm2553_vm2, %v2552_v7, %v2516_v61 }
 0xf1c   : > { %v2540_v2 = vpop.permute.xlu1 %2539  ;;  %2404 = vadd.xlane.f32.xlu0 %v2403_v56 }
 0xf1d   : > { %v3967_v6 = vsel %vm2553_vm2, %v2560_v62, %v2540_v2 }
 0xf20   : > { %v2524_v9 = vpop.permute.xlu1 %2523 }
 0xf21   : > { %v2558_v0 = vsel %vm2556_vm3, %v2555_v8, %v2524_v9 }
 0xf22   : > { %2567 = vst [vmem:[%s3975_s27 + $0x10] sm:$0xff] %v2558_v0 }
 0xf32   : > { %2418 = vrot.lane.b32.xlu0 %v3840_v29, %s3386_s17 }
 0xf36   : > { %2529 = vrot.lane.b32.xlu0 %v2088_v37, %s3386_s17 }
 0xf3a   : > { %2513 = vrot.lane.b32.xlu0 %v3800_v23, %s3385_s15 }
 0xf3e   : > { %2537 = vrot.lane.b32.xlu0 %v2291_v41, %s3385_s15  ;;  %s3280_s15 = scalar_lea.vmem %s3279_s24, 4096 }
 0xf3f   : > { %p3282_p2 = scmp.lt.s32.totalorder %s3280_s15, %s3274_s1 }
 0xf41   : > { %p3283_p10 = por %p3282_p2, %p3281_p0 }
 0xf42   : > { %2521 = vrot.lane.b32.xlu0 %v3854_v34, %s3384_s28 }
 0xf43   : > { %p3284_p6 = pnand %p3283_p10, %p3277_p13 }
 0xfa1   : > { %v2408_v11 = vpop.xlane.xlu0 %2407 }
 0xfa2   : > { %3164 = vrcp.f32 %v2408_v11 }
 0xfa5   : > { %v2405_v63 = vpop.xlane.xlu0 %2404 }
 0xfa6   : > { %3166 = vrcp.f32 %v2405_v63 }
 0xfa9   : > { %v2419_v53 = vpop.permute.xlu0 %2418 }
 0xfaa   : > { %3006 = vmatprep.subr.mxu1 %v2419_v53 }
 0xfab   : > { %3007 = vmatpush3.msra.mxu1 %v2419_v53 }
 0xfac   : > { %3008 = vmatprep.subr.mxu1 %v2417_v58 }
 0xfad   : > { %3009 = vmatpush3.msra.mxu1 %v2417_v58  ;;  %v2530_v29 = vpop.permute.xlu0 %2529 }
 0xfae   : > { %v2559_v15 = vsel %vm894_vm0, %v3898_v1, %v2530_v29 }
 0xfaf   : > { %v3165_v12 = vpop.eup %3164 }
 0xfb0   : > { %v2412_v23 = vmul.f32 %v3165_v12, %v3161_v36 }
 0xfb1   : > { %v2514_v10 = vpop.permute.xlu0 %2513 }
 0xfb2   : > { %2823 = vst.msk [vmem:[%s3717_s26 + $0x78] sm:$0xff] %vm982_vm1, %v2412_v23  ;;  %v2554_v4 = vsel %vm2553_vm2, %v2551_v18, %v2514_v10 }
 0xfb3   : > { %v3167_v34 = vpop.eup %3166 }
 0xfb4   : > { %v2411_v14 = vmul.f32 %v3167_v34, %v3163_v60 }
 0xfb5   : > { %v2538_v16 = vpop.permute.xlu0 %2537 }
 0xfb6   : > { %v2561_v17 = vsel %vm2553_vm2, %v2559_v15, %v2538_v16  ;;  %2822 = vst.msk [vmem:[%s3717_s26 + $0x70] sm:$0xff] %vm982_vm1, %v2411_v14  ;;  %3010 = vmatprep.mubr.msk.f32.mxu1 %vm982_vm1, %v2411_v14 }
 0xfb7   : > { %3011 = vmatmul.mubr.msk.f32.vlgmr.msra.gmra.mxu1 %vm982_vm1, %v2412_v23 }
 0xfb9   : > { %v2522_v19 = vpop.permute.xlu0 %2521 }
 0xfba   : > { %v2557_v20 = vsel %vm2556_vm3, %v2554_v4, %v2522_v19 }
 0xfbb   : > { %2565 = vst [vmem:[%s3975_s27] sm:$0xff] %v2557_v20 }
 0xfbc   : > { %3287 = shalt.err (!%p3284_p6)
}
 0xfbd   : > { %s3288_s26 = scalar_lea.hbm %s4004_s20, 2048  ;;  %s3292_s25 = scalar_lea.hbm %s4098_s9, 4096 }
 0xfbe   : > { %p3289_p4 = scmp.ne.s32.totalorder %s4004_s20, %s3288_s26  ;;  %p3293_p11 = scmp.lt.s32.totalorder %s4004_s20, %s4098_s9 }
 0xfbf   : > { %p3294_p5 = scmp.lt.s32.totalorder %s3292_s25, %s3288_s26 }
 0xfc0   : > { %p3290_p8 = pnand %p3289_p4, %p4125_p12 }
 0xfc1   : > { %p3295_p7 = por %p3294_p5, %p3293_p11 }
 0xfc2   : > { %p3291_p3 = pneg %p3290_p8 }
 0xfc4   : > { %p3296_p1 = pnand %p3295_p7, %p3291_p3 }
 0xfc6   : > { %3299 = shalt.err (!%p3296_p1)
}
 0xfc7   : > { %s3388_s1 = smov 128   ;;  %s3389_s24 = smov 8  }
 0xfc8   : > { %3028 = dma.vmem_to_hbm [thread:$0]  (%p4125_p12), %s4007_s18, 2048, %s4004_s20, %s2575_s21, %s3388_s1, %s3388_s1, %s3389_s24  }
 0xfc9   : > { %s2588_s15 = sshll.u32 %s3975_s27, 4  ;;  %s2835_s26 = sshll.u32 %s3464_s13, 9  ;;  %s4036_s15 = int_to_ptr.vmem [resolvable:$true] %s2588_s15 }
 0xfca   : > { %s4043_s18 = scalar_lea.hbm %s4097_s8, %s2835_s26  ;;  %s2570_s13 = scalar_lea.sflag [#allocation4], %s3590_s2 }
 0xfcb   : > { %s3390_s21 = smov [#allocation10]  }
 0xfcc   : > { %s3304_s3 = sshll.u32 %s3390_s21, 4  ;;  %s3305_s3 = int_to_ptr.vmem [resolvable:$false] %s3304_s3 }
 0xfcd   : > { %s3306_s25 = scalar_lea.vmem %s3305_s3, 1024  ;;  %p3307_p2 = scmp.lt.s32.totalorder %s4036_s15, %s3305_s3 }
0x1077   : > { %v3012_v13 = vpop.f32.mrf.mxu1 }
0x1078   : > { %2547 = vrot.lane.b32.xlu1 %v3012_v13, %s3384_s28 }
0x1079   : > { %v2494_v1 = vpop.f32.mrf.mxu1 }
0x107a   : > { %2545 = vrot.lane.b32.xlu0 %v2494_v1, %s3384_s28  ;;  %s3300_s28 = scalar_lea.vmem %s4036_s15, 512 }
0x107b   : > { %p3301_p9 = scmp.ne.s32.totalorder %s4036_s15, %s3300_s28  ;;  %p3308_p10 = scmp.lt.s32.totalorder %s3306_s25, %s3300_s28 }
0x107d   : > { %p3302_p13 = pnand %p3301_p9, %p4125_p12  ;;  %p3309_p6 = por %p3308_p10, %p3307_p2 }
0x107f   : > { %p3303_p0 = pneg %p3302_p13 }
0x1081   : > { %p3310_p4 = pnand %p3309_p6, %p3303_p0 }
0x10ea   : > { %v2548_v21 = vpop.permute.xlu1 %2547 }
0x10eb   : > { %v2564_v24 = vsel %vm2556_vm3, %v3967_v6, %v2548_v21 }
0x10ec   : > { %2568 = vst [vmem:[%s3975_s27 + $0x18] sm:$0xff] %v2564_v24  ;;  %v2546_v40 = vpop.permute.xlu0 %2545 }
0x10ed   : > { %v2563_v25 = vsel %vm2556_vm3, %v2561_v17, %v2546_v40 }
0x10ee   : > { %2566 = vst [vmem:[%s3975_s27 + $0x8] sm:$0xff] %v2563_v25 }
0x10ef   : > { %3313 = shalt.err (!%p3310_p4)
}
0x10f0   : > { %s3314_s27 = scalar_lea.hbm %s4043_s18, 512  ;;  %s3318_s1 = scalar_lea.hbm %s4097_s8, 1024 }
0x10f1   : > { %p3315_p8 = scmp.ne.s32.totalorder %s4043_s18, %s3314_s27  ;;  %p3319_p5 = scmp.lt.s32.totalorder %s4043_s18, %s4097_s8 }
0x10f2   : > { %p3320_p7 = scmp.lt.s32.totalorder %s3318_s1, %s3314_s27 }
0x10f3   : > { %p3316_p3 = pnand %p3315_p8, %p4125_p12 }
0x10f4   : > { %p3321_p1 = por %p3320_p7, %p3319_p5 }
0x10f5   : > { %p3317_p11 = pneg %p3316_p3 }
0x10f7   : > { %p3322_p9 = pnand %p3321_p1, %p3317_p11 }
0x10f9   : > { %3325 = shalt.err (!%p3322_p9)
}
0x10fa   : > { %s3391_s17 = smov 256   ;;  %s3392_s20 = smov 16  }
0x10fb   : > { %3027 = dma.vmem_to_hbm [thread:$0]  (%p4125_p12), %s4036_s15, 512, %s4043_s18, %s2570_s13, %s3391_s17, %s3391_s17, %s3392_s20  }
0x10fc PF: > { %s2619_s28 = sand.u32 1, %s3364_s30   ;;  %p4126_p13 = scmp.ne.s32.totalorder %s4109_s16, 0 }
0x10fd   : > { %p4127_p0 = scmp.ge.s32.totalorder %s3376_s12, 2  ;;  %s2620_s21 = scalar_lea.sflag [#allocation4], %s2619_s28 }
0x10ff   : > { %p3046_p2 = pnand %p4127_p0, %p4126_p13 }
0x1101   : > { %p3047_p10 = pneg %p3046_p2 }
0x1103   : > { %3355 = dma.done.wait (%p3047_p10), %s2620_s21, 512  }
0x1104   : > { %3357 = vsyncadd (%p3047_p10), %s2620_s21, 4294966784  ;;  %s2629_s3 = scalar_lea.sflag [#allocation12], %s2619_s28 }
0x1105   : > { %3359 = dma.done.wait (%p3047_p10), %s2629_s3, 2048  }
0x1106   : > { %3361 = vsyncadd (%p3047_p10), %s2629_s3, 4294965248  ;;  %p28_p12 = scmp.ge.s32.totalorder %s3532_s22, 4   ;;  %s4128_s30 = smov %s3368_s10 }
0x1107   : > { %s4129_s10 = smov %s3372_s11  ;;  %s4130_s11 = smov %s3542_s29 }
0x1108   : > { %s4131_s12 = smov %s3532_s22  ;;  %30 = sbr.rel (!%p28_p12) target bundleno = 13 (0xd), region = 136 }
0x110d   :  { %2634 = vsyncpa [#allocation3], 1 }
0x110e   :  { %2636 = vsyncpa [#allocation3 + $0x1], 1 }
0x110f   :  { %2637 = vsyncpa [#allocation6], 1 }
0x1110   :  { %2638 = vsyncpa [#allocation9], 1 }
0x1111   :  { %2639 = vsyncpa [#allocation4], 1 }
0x1112   :  { %2641 = vsyncpa [#allocation4 + $0x1], 1 }
0x1113   :  { %2642 = vsyncpa [#allocation12], 1 }
0x1114   :  { %2644 = vsyncpa [#allocation12 + $0x1], 1 }

</bundles_post_ra>
